<compile_context>
chip_gen: v6e
topology: v6e:2x2x1
jax: 0.10.0
libtpu: 0.0.40
codegen_flags: <defaults>
</compile_context>

<pallas_src>
import jax
import jax.numpy as jnp
from jax import lax
import numpy as np
from jax.experimental import pallas as pl
from jax.experimental.pallas import tpu as pltpu


# ----------------------------- fused Pallas kernel -----------------------------

def fused_blurpool_conv_kernel(x_ref, w_ref, b_ref, o_ref,
                               xpad_ref, bpad_ref, im2col_ref):
    """Fused depthwise 3x3 blur + 3x3 conv (stride=1, pad=1) + bias.

    x_ref     : (1, Cin, H, W)        unpadded input block (one batch element)
    w_ref     : (Cout, 9*Cin)         conv weights, columns ordered (dy, dx, ci)
    b_ref     : (Cout, 1)             bias
    o_ref     : (1, Cout, H*W)        lane-dense output block
    xpad_ref  : (Cin, H+2, W+2) VMEM  zero-padded input scratch
    bpad_ref  : (Cin, H+2, W+2) VMEM  zero-padded blurred scratch
    im2col_ref: (9*Cin, H*W)    VMEM  im2col patch-matrix scratch
    """
    Cin = x_ref.shape[1]
    H, W = x_ref.shape[2], x_ref.shape[3]

    # ---- in-kernel zero padding (no wrapper jnp.pad / extra HBM pass) ----
    xpad_ref[...] = jnp.zeros_like(xpad_ref)
    xpad_ref[:, 1:H + 1, 1:W + 1] = x_ref[0]

    # ---- depthwise 3x3 blur (VPU adds; one final 1/16 scale) ----
    taps = ((1.0, 2.0, 1.0), (2.0, 4.0, 2.0), (1.0, 2.0, 1.0))
    acc = jnp.zeros((Cin, H, W), jnp.float32)
    for dy in range(3):
        for dx in range(3):
            acc = acc + taps[dy][dx] * xpad_ref[:, dy:dy + H, dx:dx + W]
    # blurred activations stay in VMEM, re-padded for the following conv
    bpad_ref[...] = jnp.zeros_like(bpad_ref)
    bpad_ref[:, 1:H + 1, 1:W + 1] = acc * (1.0 / 16.0)

    # ---- im2col: build (9*Cin, H*W) patch matrix, then ONE MXU matmul ----
    k = 0
    for dy in range(3):
        for dx in range(3):
            im2col_ref[k * Cin:(k + 1) * Cin, :] = (
                bpad_ref[:, dy:dy + H, dx:dx + W].reshape(Cin, H * W))
            k += 1
    out = jnp.dot(w_ref[...], im2col_ref[...],
                  preferred_element_type=jnp.float32)      # (Cout, H*W)
    out = out + b_ref[...]                                  # bias, lane-broadcast
    o_ref[0] = out.astype(o_ref.dtype)


# ----------------------------- wrapper (glue) -----------------------------

def blurpool_conv2d(x, conv_w, conv_b):
    """x: (N, Cin, H, W) f32; conv_w: (Cout, Cin, 3, 3); conv_b: (Cout,)."""
    N, Cin, H, W = x.shape
    Cout = conv_w.shape[0]

    # weights as (Cout, 9*Cin) with columns ordered (dy, dx, ci) to match im2col
    w_r = jnp.transpose(conv_w, (0, 2, 3, 1)).reshape(Cout, 9 * Cin)
    b_r = conv_b.reshape(Cout, 1)

    out_flat = pl.pallas_call(
        fused_blurpool_conv_kernel,
        out_shape=jax.ShapeDtypeStruct((N, Cout, H * W), jnp.float32),
        grid_spec=pltpu.PrefetchScalarGridSpec(
            num_scalar_prefetch=0,
            grid=(N,),
            in_specs=[
                pl.BlockSpec((1, Cin, H, W), lambda n: (n, 0, 0, 0)),
                pl.BlockSpec((Cout, 9 * Cin), lambda n: (0, 0)),
                pl.BlockSpec((Cout, 1), lambda n: (0, 0)),
            ],
            out_specs=pl.BlockSpec((1, Cout, H * W), lambda n: (n, 0, 0)),
            scratch_shapes=[
                pltpu.VMEM((Cin, H + 2, W + 2), jnp.float32),   # padded input
                pltpu.VMEM((Cin, H + 2, W + 2), jnp.float32),   # padded blurred
                pltpu.VMEM((9 * Cin, H * W), jnp.float32),      # im2col patches
            ],
        ),
        compiler_params=pltpu.CompilerParams(dimension_semantics=("parallel",)),
    )(x, w_r, b_r)

    # contiguous reshape back to NCHW (metadata only)
    return out_flat.reshape(N, Cout, H, W)


# ----------------------------- reference (plain JAX) -----------------------------

def reference(x, conv_w, conv_b):
    N, Cin, H, W = x.shape
    blur = jnp.array([[1, 2, 1], [2, 4, 2], [1, 2, 1]], jnp.float32) / 16.0
    filt = jnp.tile(blur[None, None], (Cin, 1, 1, 1))  # (Cin, 1, 3, 3) OIHW
    blurred = lax.conv_general_dilated(
        x, filt, (1, 1), ((1, 1), (1, 1)),
        dimension_numbers=("NCHW", "OIHW", "NCHW"),
        feature_group_count=Cin)
    out = lax.conv_general_dilated(
        blurred, conv_w, (1, 1), ((1, 1), (1, 1)),
        dimension_numbers=("NCHW", "OIHW", "NCHW"))
    return out + conv_b[None, :, None, None]


# ----------------------------- main -----------------------------

if __name__ == "__main__":
    N, Cin, Cout, H, W = 2, 4, 8, 16, 16

    key = jax.random.PRNGKey(0)
    kx, kw, kb = jax.random.split(key, 3)
    x = jax.random.normal(kx, (N, Cin, H, W), jnp.float32)
    conv_w = jax.random.normal(kw, (Cout, Cin, 3, 3), jnp.float32) * 0.1
    conv_b = jax.random.normal(kb, (Cout,), jnp.float32) * 0.1

    out = jax.jit(blurpool_conv2d)(x, conv_w, conv_b)
    out = jax.block_until_ready(out)

    ref = jax.block_until_ready(reference(x, conv_w, conv_b))
    assert out.shape == (N, Cout, H, W), out.shape
    assert np.allclose(np.asarray(out), np.asarray(ref), atol=1e-4, rtol=1e-4), (
        "mismatch vs plain-JAX reference")

    print("KERNEL_OK")
</pallas_src>

<mosaic_0001>
module attributes {stable_mosaic.version = 11 : i64} {
  func.func @fused_blurpool_conv_kernel(%arg0: i32, %arg1: memref<1x4x16x16xf32, #tpu.memory_space<vmem>>, %arg2: memref<8x36xf32, #tpu.memory_space<vmem>>, %arg3: memref<8x1xf32, #tpu.memory_space<vmem>>, %arg4: memref<1x8x256xf32, #tpu.memory_space<vmem>>, %arg5: memref<4x18x18xf32, #tpu.memory_space<vmem>>, %arg6: memref<4x18x18xf32, #tpu.memory_space<vmem>>, %arg7: memref<36x256xf32, #tpu.memory_space<vmem>>) attributes {dimension_semantics = [#tpu.dimension_semantics<parallel>], iteration_bounds = array<i64: 2>, scalar_prefetch = 0 : i64, scratch_operands = 3 : i64, tpu.core_type = #tpu.core_type<tc>, window_params = [{transform_indices = @transform_0, window_bounds = array<i64: 1, 4, 16, 16>}, {pipeline_mode = #tpu.pipeline_mode<synchronous>, transform_indices = @transform_1, window_bounds = array<i64: 8, 36>}, {pipeline_mode = #tpu.pipeline_mode<synchronous>, transform_indices = @transform_2, window_bounds = array<i64: 8, 1>}, {transform_indices = @transform_3, window_bounds = array<i64: 1, 8, 256>}]} {
    %cst = arith.constant 0.000000e+00 : f32
    %0 = vector.broadcast %cst : f32 to vector<4x18x18xf32>
    %c0 = arith.constant 0 : index
    %c0_0 = arith.constant 0 : index
    %c0_1 = arith.constant 0 : index
    %1 = vector.load %arg5[%c0, %c0_0, %c0_1] : memref<4x18x18xf32, #tpu.memory_space<vmem>>, vector<4x18x18xf32>
    tpu.vector_store %arg5[%c0, %c0_0, %c0_1], %0 {strides = array<i32>} : memref<4x18x18xf32, #tpu.memory_space<vmem>>, vector<4x18x18xf32>,
    %c0_2 = arith.constant 0 : index
    %c0_3 = arith.constant 0 : index
    %c0_4 = arith.constant 0 : index
    %c0_5 = arith.constant 0 : index
    %2 = vector.load %arg1[%c0_2, %c0_3, %c0_4, %c0_5] : memref<1x4x16x16xf32, #tpu.memory_space<vmem>>, vector<1x4x16x16xf32>
    %3 = vector.shape_cast %2 : vector<1x4x16x16xf32> to vector<4x16x16xf32>
    %c0_6 = arith.constant 0 : index
    %c1 = arith.constant 1 : index
    %c1_7 = arith.constant 1 : index
    %4 = vector.load %arg5[%c0_6, %c1, %c1_7] : memref<4x18x18xf32, #tpu.memory_space<vmem>>, vector<4x16x16xf32>
    tpu.vector_store %arg5[%c0_6, %c1, %c1_7], %3 {strides = array<i32>} : memref<4x18x18xf32, #tpu.memory_space<vmem>>, vector<4x16x16xf32>,
    %cst_8 = arith.constant 0.000000e+00 : f32
    %5 = vector.broadcast %cst_8 : f32 to vector<4x16x16xf32>
    %c0_9 = arith.constant 0 : index
    %c0_10 = arith.constant 0 : index
    %c0_11 = arith.constant 0 : index
    %6 = vector.load %arg5[%c0_9, %c0_10, %c0_11] : memref<4x18x18xf32, #tpu.memory_space<vmem>>, vector<4x16x16xf32>
    %cst_12 = arith.constant 1.000000e+00 : f32
    %7 = vector.broadcast %cst_12 : f32 to vector<4x16x16xf32>
    %8 = arith.mulf %7, %6 : vector<4x16x16xf32>
    %9 = arith.addf %5, %8 : vector<4x16x16xf32>
    %c0_13 = arith.constant 0 : index
    %c0_14 = arith.constant 0 : index
    %c1_15 = arith.constant 1 : index
    %10 = vector.load %arg5[%c0_13, %c0_14, %c1_15] : memref<4x18x18xf32, #tpu.memory_space<vmem>>, vector<4x16x16xf32>
    %cst_16 = arith.constant 2.000000e+00 : f32
    %11 = vector.broadcast %cst_16 : f32 to vector<4x16x16xf32>
    %12 = arith.mulf %11, %10 : vector<4x16x16xf32>
    %13 = arith.addf %9, %12 : vector<4x16x16xf32>
    %c0_17 = arith.constant 0 : index
    %c0_18 = arith.constant 0 : index
    %c2 = arith.constant 2 : index
    %14 = vector.load %arg5[%c0_17, %c0_18, %c2] : memref<4x18x18xf32, #tpu.memory_space<vmem>>, vector<4x16x16xf32>
    %cst_19 = arith.constant 1.000000e+00 : f32
    %15 = vector.broadcast %cst_19 : f32 to vector<4x16x16xf32>
    %16 = arith.mulf %15, %14 : vector<4x16x16xf32>
    %17 = arith.addf %13, %16 : vector<4x16x16xf32>
    %c0_20 = arith.constant 0 : index
    %c1_21 = arith.constant 1 : index
    %c0_22 = arith.constant 0 : index
    %18 = vector.load %arg5[%c0_20, %c1_21, %c0_22] : memref<4x18x18xf32, #tpu.memory_space<vmem>>, vector<4x16x16xf32>
    %cst_23 = arith.constant 2.000000e+00 : f32
    %19 = vector.broadcast %cst_23 : f32 to vector<4x16x16xf32>
    %20 = arith.mulf %19, %18 : vector<4x16x16xf32>
    %21 = arith.addf %17, %20 : vector<4x16x16xf32>
    %c0_24 = arith.constant 0 : index
    %c1_25 = arith.constant 1 : index
    %c1_26 = arith.constant 1 : index
    %22 = vector.load %arg5[%c0_24, %c1_25, %c1_26] : memref<4x18x18xf32, #tpu.memory_space<vmem>>, vector<4x16x16xf32>
    %cst_27 = arith.constant 4.000000e+00 : f32
    %23 = vector.broadcast %cst_27 : f32 to vector<4x16x16xf32>
    %24 = arith.mulf %23, %22 : vector<4x16x16xf32>
    %25 = arith.addf %21, %24 : vector<4x16x16xf32>
    %c0_28 = arith.constant 0 : index
    %c1_29 = arith.constant 1 : index
    %c2_30 = arith.constant 2 : index
    %26 = vector.load %arg5[%c0_28, %c1_29, %c2_30] : memref<4x18x18xf32, #tpu.memory_space<vmem>>, vector<4x16x16xf32>
    %cst_31 = arith.constant 2.000000e+00 : f32
    %27 = vector.broadcast %cst_31 : f32 to vector<4x16x16xf32>
    %28 = arith.mulf %27, %26 : vector<4x16x16xf32>
    %29 = arith.addf %25, %28 : vector<4x16x16xf32>
    %c0_32 = arith.constant 0 : index
    %c2_33 = arith.constant 2 : index
    %c0_34 = arith.constant 0 : index
    %30 = vector.load %arg5[%c0_32, %c2_33, %c0_34] : memref<4x18x18xf32, #tpu.memory_space<vmem>>, vector<4x16x16xf32>
    %cst_35 = arith.constant 1.000000e+00 : f32
    %31 = vector.broadcast %cst_35 : f32 to vector<4x16x16xf32>
    %32 = arith.mulf %31, %30 : vector<4x16x16xf32>
    %33 = arith.addf %29, %32 : vector<4x16x16xf32>
    %c0_36 = arith.constant 0 : index
    %c2_37 = arith.constant 2 : index
    %c1_38 = arith.constant 1 : index
    %34 = vector.load %arg5[%c0_36, %c2_37, %c1_38] : memref<4x18x18xf32, #tpu.memory_space<vmem>>, vector<4x16x16xf32>
    %cst_39 = arith.constant 2.000000e+00 : f32
    %35 = vector.broadcast %cst_39 : f32 to vector<4x16x16xf32>
    %36 = arith.mulf %35, %34 : vector<4x16x16xf32>
    %37 = arith.addf %33, %36 : vector<4x16x16xf32>
    %c0_40 = arith.constant 0 : index
    %c2_41 = arith.constant 2 : index
    %c2_42 = arith.constant 2 : index
    %38 = vector.load %arg5[%c0_40, %c2_41, %c2_42] : memref<4x18x18xf32, #tpu.memory_space<vmem>>, vector<4x16x16xf32>
    %cst_43 = arith.constant 1.000000e+00 : f32
    %39 = vector.broadcast %cst_43 : f32 to vector<4x16x16xf32>
    %40 = arith.mulf %39, %38 : vector<4x16x16xf32>
    %41 = arith.addf %37, %40 : vector<4x16x16xf32>
    %cst_44 = arith.constant 0.000000e+00 : f32
    %42 = vector.broadcast %cst_44 : f32 to vector<4x18x18xf32>
    %c0_45 = arith.constant 0 : index
    %c0_46 = arith.constant 0 : index
    %c0_47 = arith.constant 0 : index
    %43 = vector.load %arg6[%c0_45, %c0_46, %c0_47] : memref<4x18x18xf32, #tpu.memory_space<vmem>>, vector<4x18x18xf32>
    tpu.vector_store %arg6[%c0_45, %c0_46, %c0_47], %42 {strides = array<i32>} : memref<4x18x18xf32, #tpu.memory_space<vmem>>, vector<4x18x18xf32>,
    %cst_48 = arith.constant 6.250000e-02 : f32
    %44 = vector.broadcast %cst_48 : f32 to vector<4x16x16xf32>
    %45 = arith.mulf %41, %44 : vector<4x16x16xf32>
    %c0_49 = arith.constant 0 : index
    %c1_50 = arith.constant 1 : index
    %c1_51 = arith.constant 1 : index
    %46 = vector.load %arg6[%c0_49, %c1_50, %c1_51] : memref<4x18x18xf32, #tpu.memory_space<vmem>>, vector<4x16x16xf32>
    tpu.vector_store %arg6[%c0_49, %c1_50, %c1_51], %45 {strides = array<i32>} : memref<4x18x18xf32, #tpu.memory_space<vmem>>, vector<4x16x16xf32>,
    %c0_52 = arith.constant 0 : index
    %c0_53 = arith.constant 0 : index
    %c0_54 = arith.constant 0 : index
    %47 = vector.load %arg6[%c0_52, %c0_53, %c0_54] : memref<4x18x18xf32, #tpu.memory_space<vmem>>, vector<4x16x16xf32>
    %48 = vector.shape_cast %47 : vector<4x16x16xf32> to vector<4x256xf32>
    %c0_55 = arith.constant 0 : index
    %c0_56 = arith.constant 0 : index
    %49 = vector.load %arg7[%c0_55, %c0_56] : memref<36x256xf32, #tpu.memory_space<vmem>>, vector<4x256xf32>
    tpu.vector_store %arg7[%c0_55, %c0_56], %48 {strides = array<i32>} : memref<36x256xf32, #tpu.memory_space<vmem>>, vector<4x256xf32>,
    %c0_57 = arith.constant 0 : index
    %c0_58 = arith.constant 0 : index
    %c1_59 = arith.constant 1 : index
    %50 = vector.load %arg6[%c0_57, %c0_58, %c1_59] : memref<4x18x18xf32, #tpu.memory_space<vmem>>, vector<4x16x16xf32>
    %51 = vector.shape_cast %50 : vector<4x16x16xf32> to vector<4x256xf32>
    %c4 = arith.constant 4 : index
    %c0_60 = arith.constant 0 : index
    %52 = vector.load %arg7[%c4, %c0_60] : memref<36x256xf32, #tpu.memory_space<vmem>>, vector<4x256xf32>
    tpu.vector_store %arg7[%c4, %c0_60], %51 {strides = array<i32>} : memref<36x256xf32, #tpu.memory_space<vmem>>, vector<4x256xf32>,
    %c0_61 = arith.constant 0 : index
    %c0_62 = arith.constant 0 : index
    %c2_63 = arith.constant 2 : index
    %53 = vector.load %arg6[%c0_61, %c0_62, %c2_63] : memref<4x18x18xf32, #tpu.memory_space<vmem>>, vector<4x16x16xf32>
    %54 = vector.shape_cast %53 : vector<4x16x16xf32> to vector<4x256xf32>
    %c8 = arith.constant 8 : index
    %c0_64 = arith.constant 0 : index
    %55 = vector.load %arg7[%c8, %c0_64] : memref<36x256xf32, #tpu.memory_space<vmem>>, vector<4x256xf32>
    tpu.vector_store %arg7[%c8, %c0_64], %54 {strides = array<i32>} : memref<36x256xf32, #tpu.memory_space<vmem>>, vector<4x256xf32>,
    %c0_65 = arith.constant 0 : index
    %c1_66 = arith.constant 1 : index
    %c0_67 = arith.constant 0 : index
    %56 = vector.load %arg6[%c0_65, %c1_66, %c0_67] : memref<4x18x18xf32, #tpu.memory_space<vmem>>, vector<4x16x16xf32>
    %57 = vector.shape_cast %56 : vector<4x16x16xf32> to vector<4x256xf32>
    %c12 = arith.constant 12 : index
    %c0_68 = arith.constant 0 : index
    %58 = vector.load %arg7[%c12, %c0_68] : memref<36x256xf32, #tpu.memory_space<vmem>>, vector<4x256xf32>
    tpu.vector_store %arg7[%c12, %c0_68], %57 {strides = array<i32>} : memref<36x256xf32, #tpu.memory_space<vmem>>, vector<4x256xf32>,
    %c0_69 = arith.constant 0 : index
    %c1_70 = arith.constant 1 : index
    %c1_71 = arith.constant 1 : index
    %59 = vector.load %arg6[%c0_69, %c1_70, %c1_71] : memref<4x18x18xf32, #tpu.memory_space<vmem>>, vector<4x16x16xf32>
    %60 = vector.shape_cast %59 : vector<4x16x16xf32> to vector<4x256xf32>
    %c16 = arith.constant 16 : index
    %c0_72 = arith.constant 0 : index
    %61 = vector.load %arg7[%c16, %c0_72] : memref<36x256xf32, #tpu.memory_space<vmem>>, vector<4x256xf32>
    tpu.vector_store %arg7[%c16, %c0_72], %60 {strides = array<i32>} : memref<36x256xf32, #tpu.memory_space<vmem>>, vector<4x256xf32>,
    %c0_73 = arith.constant 0 : index
    %c1_74 = arith.constant 1 : index
    %c2_75 = arith.constant 2 : index
    %62 = vector.load %arg6[%c0_73, %c1_74, %c2_75] : memref<4x18x18xf32, #tpu.memory_space<vmem>>, vector<4x16x16xf32>
    %63 = vector.shape_cast %62 : vector<4x16x16xf32> to vector<4x256xf32>
    %c20 = arith.constant 20 : index
    %c0_76 = arith.constant 0 : index
    %64 = vector.load %arg7[%c20, %c0_76] : memref<36x256xf32, #tpu.memory_space<vmem>>, vector<4x256xf32>
    tpu.vector_store %arg7[%c20, %c0_76], %63 {strides = array<i32>} : memref<36x256xf32, #tpu.memory_space<vmem>>, vector<4x256xf32>,
    %c0_77 = arith.constant 0 : index
    %c2_78 = arith.constant 2 : index
    %c0_79 = arith.constant 0 : index
    %65 = vector.load %arg6[%c0_77, %c2_78, %c0_79] : memref<4x18x18xf32, #tpu.memory_space<vmem>>, vector<4x16x16xf32>
    %66 = vector.shape_cast %65 : vector<4x16x16xf32> to vector<4x256xf32>
    %c24 = arith.constant 24 : index
    %c0_80 = arith.constant 0 : index
    %67 = vector.load %arg7[%c24, %c0_80] : memref<36x256xf32, #tpu.memory_space<vmem>>, vector<4x256xf32>
    tpu.vector_store %arg7[%c24, %c0_80], %66 {strides = array<i32>} : memref<36x256xf32, #tpu.memory_space<vmem>>, vector<4x256xf32>,
    %c0_81 = arith.constant 0 : index
    %c2_82 = arith.constant 2 : index
    %c1_83 = arith.constant 1 : index
    %68 = vector.load %arg6[%c0_81, %c2_82, %c1_83] : memref<4x18x18xf32, #tpu.memory_space<vmem>>, vector<4x16x16xf32>
    %69 = vector.shape_cast %68 : vector<4x16x16xf32> to vector<4x256xf32>
    %c28 = arith.constant 28 : index
    %c0_84 = arith.constant 0 : index
    %70 = vector.load %arg7[%c28, %c0_84] : memref<36x256xf32, #tpu.memory_space<vmem>>, vector<4x256xf32>
    tpu.vector_store %arg7[%c28, %c0_84], %69 {strides = array<i32>} : memref<36x256xf32, #tpu.memory_space<vmem>>, vector<4x256xf32>,
    %c0_85 = arith.constant 0 : index
    %c2_86 = arith.constant 2 : index
    %c2_87 = arith.constant 2 : index
    %71 = vector.load %arg6[%c0_85, %c2_86, %c2_87] : memref<4x18x18xf32, #tpu.memory_space<vmem>>, vector<4x16x16xf32>
    %72 = vector.shape_cast %71 : vector<4x16x16xf32> to vector<4x256xf32>
    %c32 = arith.constant 32 : index
    %c0_88 = arith.constant 0 : index
    %73 = vector.load %arg7[%c32, %c0_88] : memref<36x256xf32, #tpu.memory_space<vmem>>, vector<4x256xf32>
    tpu.vector_store %arg7[%c32, %c0_88], %72 {strides = array<i32>} : memref<36x256xf32, #tpu.memory_space<vmem>>, vector<4x256xf32>,
    %c0_89 = arith.constant 0 : index
    %c0_90 = arith.constant 0 : index
    %74 = vector.load %arg2[%c0_89, %c0_90] : memref<8x36xf32, #tpu.memory_space<vmem>>, vector<8x36xf32>
    %c0_91 = arith.constant 0 : index
    %c0_92 = arith.constant 0 : index
    %75 = vector.load %arg7[%c0_91, %c0_92] : memref<36x256xf32, #tpu.memory_space<vmem>>, vector<36x256xf32>
    %cst_93 = arith.constant dense<0.000000e+00> : vector<8x256xf32>
    %76 = tpu.matmul %74, %75, %cst_93 {dimension_numbers = #tpu.dot_dimension_numbers<[1], [0], [0], [1], [0, 0, 1, 1], [], []>} : vector<8x36xf32>, vector<36x256xf32>, vector<8x256xf32> -> vector<8x256xf32>
    %c0_94 = arith.constant 0 : index
    %c0_95 = arith.constant 0 : index
    %77 = vector.load %arg3[%c0_94, %c0_95] : memref<8x1xf32, #tpu.memory_space<vmem>>, vector<8x1xf32>
    %78 = vector.broadcast %77 : vector<8x1xf32> to vector<8x256xf32>
    %79 = arith.addf %76, %78 : vector<8x256xf32>
    %c0_96 = arith.constant 0 : index
    %c0_97 = arith.constant 0 : index
    %c0_98 = arith.constant 0 : index
    %80 = vector.load %arg4[%c0_96, %c0_97, %c0_98] : memref<1x8x256xf32, #tpu.memory_space<vmem>>, vector<1x8x256xf32>
    %81 = vector.shape_cast %80 : vector<1x8x256xf32> to vector<8x256xf32>
    %82 = vector.shape_cast %79 : vector<8x256xf32> to vector<1x8x256xf32>
    tpu.vector_store %arg4[%c0_96, %c0_97, %c0_98], %82 {strides = array<i32>} : memref<1x8x256xf32, #tpu.memory_space<vmem>>, vector<1x8x256xf32>,
    return
  }
  func.func @transform_0(%arg0: i32) -> (i32, i32, i32, i32) {
    %c0_i32 = arith.constant 0 : i32
    %c0_i32_0 = arith.constant 0 : i32
    %c0_i32_1 = arith.constant 0 : i32
    %c0_i32_2 = arith.constant 0 : i32
    return %arg0, %c0_i32, %c0_i32_0, %c0_i32_1 : i32, i32, i32, i32
  }
  func.func @transform_1(%arg0: i32) -> (i32, i32) {
    %c0_i32 = arith.constant 0 : i32
    %c0_i32_0 = arith.constant 0 : i32
    %c0_i32_1 = arith.constant 0 : i32
    return %c0_i32, %c0_i32_0 : i32, i32
  }
  func.func @transform_2(%arg0: i32) -> (i32, i32) {
    %c0_i32 = arith.constant 0 : i32
    %c0_i32_0 = arith.constant 0 : i32
    %c0_i32_1 = arith.constant 0 : i32
    return %c0_i32, %c0_i32_0 : i32, i32
  }
  func.func @transform_3(%arg0: i32) -> (i32, i32, i32) {
    %c0_i32 = arith.constant 0 : i32
    %c0_i32_0 = arith.constant 0 : i32
    %c0_i32_1 = arith.constant 0 : i32
    return %arg0, %c0_i32, %c0_i32_0 : i32, i32, i32
  }
}

</mosaic_0001>

<bundles_post_ra>
// kernel: blurpool_conv2d.1
= control target key start
LH: loop header
LB: loop body
LE: loop exit
PB: predicated region body
PF: predicated region fallthrough
CT: control target
= control target key end

     0   :  { %s3038_s12 = smov 0   ;;  %s4881_s0 = inlined_call_operand.vmem [shape: f32[2,4,16,16], index: 0, kind: input, shape index: {}]   ;;  %s4882_s1 = inlined_call_operand.vmem [shape: f32[8,36], index: 1, kind: input, shape index: {}]   ;;  %s4883_s2 = inlined_call_operand.vmem [shape: f32[8,1], index: 2, kind: input, shape index: {}]   ;;  %s4884_s3 = inlined_call_operand.vmem [shape: f32[2,8,256], index: 3, kind: output, shape index: {}]  }
   0x1 LB: > { %s2937_s13 = sadd.s32 4294967295, %s3002_s12   ;;  %p2941_p0 = scmp.ge.s32.totalorder %s3002_s12, 1  ;;  %s3002_s12 = sphi %s3038_s12, %s13_s12  }
   0x2   : > { %p137_p1 = scmp.lt.s32.totalorder %s3002_s12, 3 }
   0x4   : > { %p138_p2 = pnand %p2941_p0, %p137_p1 }
   0x6   : > { %141 = sbr.rel (%p138_p2) target bundleno = 1139 (0x473), region = 32 }
   0xb   : > { %p3048_p3 = scmp.lt.s32.totalorder %s2937_s13, 1  ;;  %vm171_vm0 = vcmask 146432   ;;  %vm174_vm1 = vcmask 140288   ;;  %v4885_v0 = vmov 0.0   ;;  %s3005_s19 = smov 1   ;;  %vm225_vm2 = vcmask 138248  }
   0xc   : > { %176 = vst.msk [vmem:[#allocation2 + $0x18] sm:$0xff] %vm171_vm0, %v4885_v0  ;;  %177 = vst.msk [vmem:[#allocation2 + $0x20] sm:$0xff] %vm171_vm0, %v4885_v0  ;;  %2873 = vmatprep.mubr.f32.mxu0 %v4885_v0  ;;  %s3006_s20 = smov 126   ;;  %s3007_s21 = smov 127   ;;  %vm814_vm3 = vcmask 130048   ;;  %vm816_vm4 = vcmask 261120  }
   0xd   : > { %172 = vst.msk [vmem:[#allocation2] sm:$0xff] %vm171_vm0, %v4885_v0  ;;  %173 = vst.msk [vmem:[#allocation2 + $0x8] sm:$0xff] %vm171_vm0, %v4885_v0  ;;  %s5003_s13 = smov (!%p3048_p3, %s2937_s13), 1  ;;  %s3010_s22 = smov 32   ;;  %vm818_vm5 = vcmask 392192   ;;  %vm820_vm6 = vcmask 523264  }
   0xe   : > { %179 = vst.msk [vmem:[#allocation2 + $0x30] sm:$0xff] %vm171_vm0, %v4885_v0  ;;  %180 = vst.msk [vmem:[#allocation2 + $0x38] sm:$0xff] %vm171_vm0, %v4885_v0  ;;  %s2951_s15 = sshll.u32 %s5003_s13, 6  ;;  %s3011_s23 = smov 64   ;;  %vm822_vm7 = vcmask 654336   ;;  %vm824_vm8 = vcmask 785408  }
   0xf   : > { %182 = vst.msk [vmem:[#allocation2 + $0x48] sm:$0xff] %vm171_vm0, %v4885_v0  ;;  %183 = vst.msk [vmem:[#allocation2 + $0x50] sm:$0xff] %vm171_vm0, %v4885_v0  ;;  %s165_s18 = scalar_lea.vmem %s4881_s0, %s2951_s15  ;;  %s3012_s24 = smov 96   ;;  %vm826_vm9 = vcmask 916480   ;;  %vm2802_vm10 = vcmask 1043456   ;;  %vm2798_vm11 = vcmask 293888  }
  0x10   : > { %554 = vst.msk [vmem:[#allocation3] sm:$0xff] %vm171_vm0, %v4885_v0  ;;  %555 = vst.msk [vmem:[#allocation3 + $0x8] sm:$0xff] %vm171_vm0, %v4885_v0  ;;  %v187_v1 = vld [vmem:[%s165_s18 + $0x10] sm:$0xff]  ;;  %v185_v2 = vld [vmem:[%s165_s18] sm:$0xff]  ;;  %s3013_s25 = smov 16   ;;  %s3014_s26 = smov 48  }
  0x11   : > { %557 = vst.msk [vmem:[#allocation3 + $0x18] sm:$0xff] %vm171_vm0, %v4885_v0  ;;  %558 = vst.msk [vmem:[#allocation3 + $0x20] sm:$0xff] %vm171_vm0, %v4885_v0  ;;  %205 = vrot.lane.b32.xlu1 %v187_v1, %s3005_s19  ;;  %201 = vrot.lane.b32.xlu0 %v185_v2, %s3005_s19  ;;  %v188_v3 = vld [vmem:[%s165_s18 + $0x18] sm:$0xff]  ;;  %v186_v4 = vld [vmem:[%s165_s18 + $0x8] sm:$0xff]  ;;  %s3015_s27 = smov 80   ;;  %s3016_s28 = smov 112  }
  0x12   : > { %560 = vst.msk [vmem:[#allocation3 + $0x30] sm:$0xff] %vm171_vm0, %v4885_v0  ;;  %561 = vst.msk [vmem:[#allocation3 + $0x38] sm:$0xff] %vm171_vm0, %v4885_v0  ;;  %v190_v5 = vld [vmem:[%s165_s18 + $0x28] sm:$0xff]  ;;  %v189_v6 = vld [vmem:[%s165_s18 + $0x20] sm:$0xff]  ;;  %s2952_s6 = sshll.u32 %s5003_s13, 4 }
  0x13   : > { %563 = vst.msk [vmem:[#allocation3 + $0x48] sm:$0xff] %vm171_vm0, %v4885_v0  ;;  %564 = vst.msk [vmem:[#allocation3 + $0x50] sm:$0xff] %vm171_vm0, %v4885_v0  ;;  %v192_v7 = vld [vmem:[%s165_s18 + $0x38] sm:$0xff]  ;;  %v191_v8 = vld [vmem:[%s165_s18 + $0x30] sm:$0xff]  ;;  %s170_s9 = scalar_lea.vmem %s4884_s3, %s2952_s6 }
  0x14   : > { %178 = vst.msk [vmem:[#allocation2 + $0x28] sm:$0x3] %vm174_vm1, %v4885_v0  ;;  %175 = vst.msk [vmem:[#allocation2 + $0x10] sm:$0x3] %vm174_vm1, %v4885_v0 }
  0x15   : > { %181 = vst.msk [vmem:[#allocation2 + $0x40] sm:$0x3] %vm174_vm1, %v4885_v0  ;;  %184 = vst.msk [vmem:[#allocation2 + $0x58] sm:$0x3] %vm174_vm1, %v4885_v0  ;;  %207 = vrot.lane.b32.xlu1 %v188_v3, %s3005_s19  ;;  %203 = vrot.lane.b32.xlu0 %v186_v4, %s3005_s19 }
  0x16   : > { %556 = vst.msk [vmem:[#allocation3 + $0x10] sm:$0x3] %vm174_vm1, %v4885_v0  ;;  %559 = vst.msk [vmem:[#allocation3 + $0x28] sm:$0x3] %vm174_vm1, %v4885_v0 }
  0x17   : > { %562 = vst.msk [vmem:[#allocation3 + $0x40] sm:$0x3] %vm174_vm1, %v4885_v0  ;;  %565 = vst.msk [vmem:[#allocation3 + $0x58] sm:$0x3] %vm174_vm1, %v4885_v0 }
  0x19   : > { %211 = vrot.lane.b32.xlu1 %v190_v5, %s3005_s19  ;;  %209 = vrot.lane.b32.xlu0 %v189_v6, %s3005_s19 }
  0x1d   : > { %215 = vrot.lane.b32.xlu1 %v192_v7, %s3005_s19  ;;  %213 = vrot.lane.b32.xlu0 %v191_v8, %s3005_s19 }
  0x83   : > { %v206_v9 = vpop.permute.xlu1 %205  ;;  %v202_v10 = vpop.permute.xlu0 %201 }
  0x84   : > { %228 = vst.msk [vmem:[#allocation2 + $0x19] sm:$0xff] %vm225_vm2, %v206_v9  ;;  %226 = vst.msk [vmem:[#allocation2 + $0x1] sm:$0xff] %vm225_vm2, %v202_v10 }
  0x87   : > { %v208_v11 = vpop.permute.xlu1 %207  ;;  %v204_v12 = vpop.permute.xlu0 %203 }
  0x88   : > { %229 = vst.msk [vmem:[#allocation2 + $0x21] sm:$0xff] %vm225_vm2, %v208_v11  ;;  %227 = vst.msk [vmem:[#allocation2 + $0x9] sm:$0xff] %vm225_vm2, %v204_v12 }
  0x8b   : > { %v212_v13 = vpop.permute.xlu1 %211  ;;  %v210_v14 = vpop.permute.xlu0 %209  ;;  %v3139_v20 = vld [vmem:[#allocation2] sm:$0xff]  ;;  %v3149_v23 = vld [vmem:[#allocation2 + $0x18] sm:$0xff] }
  0x8c   : > { %231 = vst.msk [vmem:[#allocation2 + $0x39] sm:$0xff] %vm225_vm2, %v212_v13  ;;  %230 = vst.msk [vmem:[#allocation2 + $0x31] sm:$0xff] %vm225_vm2, %v210_v14  ;;  %v250_v36 = vmul.f32 2.0, %v3139_v20  ;;  %v252_v39 = vmul.f32 2.0, %v3149_v23  ;;  %v338_v47 = vld [vmem:[#allocation2 + $0x1] sm:$0xff]  ;;  %v340_v52 = vld [vmem:[#allocation2 + $0x19] sm:$0xff] }
  0x8d   : > { %v362_v49 = vmul.f32 4.0, %v338_v47  ;;  %v364_v54 = vmul.f32 4.0, %v340_v52  ;;  %v3227_v60 = vmul.f32 2.0, %v338_v47  ;;  %v3237_v63 = vmul.f32 2.0, %v340_v52 }
  0x8f   : > { %v216_v15 = vpop.permute.xlu1 %215  ;;  %v214_v16 = vpop.permute.xlu0 %213  ;;  %v3125_v17 = vld [vmem:[#allocation2 + $0x20] sm:$0xff]  ;;  %v3127_v18 = vld [vmem:[#allocation2 + $0x8] sm:$0xff] }
  0x90   : > { %233 = vst.msk [vmem:[#allocation2 + $0x51] sm:$0xff] %vm225_vm2, %v216_v15  ;;  %232 = vst.msk [vmem:[#allocation2 + $0x49] sm:$0xff] %vm225_vm2, %v214_v16  ;;  %312 = vrot.lane.b32.xlu1 %v3125_v17, %s3006_s20  ;;  %308 = vrot.lane.b32.xlu0 %v3127_v18, %s3006_s20  ;;  %v3155_v24 = vld [vmem:[#allocation2 + $0xa] sm:$0xff]  ;;  %v3165_v27 = vld [vmem:[#allocation2 + $0x22] sm:$0xff]  ;;  %v251_v32 = vmul.f32 2.0, %v3127_v18  ;;  %v253_v35 = vmul.f32 2.0, %v3125_v17 }
  0x91   : > { %v3171_v28 = vld [vmem:[#allocation2 + $0x2] sm:$0xff]  ;;  %v3181_v31 = vld [vmem:[#allocation2 + $0x1a] sm:$0xff]  ;;  %v467_v1 = vmul.f32 2.0, %v3155_v24  ;;  %v469_v4 = vmul.f32 2.0, %v3165_v27 }
  0x92   : > { %v339_v40 = vld [vmem:[#allocation2 + $0x9] sm:$0xff]  ;;  %v341_v44 = vld [vmem:[#allocation2 + $0x21] sm:$0xff]  ;;  %v466_v5 = vmul.f32 2.0, %v3171_v28  ;;  %v468_v8 = vmul.f32 2.0, %v3181_v31 }
  0x93   : > { %v3135_v19 = vld [vmem:[#allocation2 + $0x38] sm:$0xff]  ;;  %v3147_v22 = vld [vmem:[#allocation2 + $0x30] sm:$0xff]  ;;  %v363_v41 = vmul.f32 4.0, %v339_v40  ;;  %v365_v46 = vmul.f32 4.0, %v341_v44  ;;  %v3214_v56 = vmul.f32 2.0, %v339_v40  ;;  %v3221_v59 = vmul.f32 2.0, %v341_v44 }
  0x94   : > { %316 = vrot.lane.b32.xlu0 %v3135_v19, %s3006_s20  ;;  %v3163_v26 = vld [vmem:[#allocation2 + $0x3a] sm:$0xff]  ;;  %v3179_v30 = vld [vmem:[#allocation2 + $0x32] sm:$0xff]  ;;  %v255_v34 = vmul.f32 2.0, %v3135_v19  ;;  %v254_v38 = vmul.f32 2.0, %v3147_v22 }
  0x95   : > { %v343_v43 = vld [vmem:[#allocation2 + $0x39] sm:$0xff]  ;;  %v342_v51 = vld [vmem:[#allocation2 + $0x31] sm:$0xff]  ;;  %v471_v3 = vmul.f32 2.0, %v3163_v26  ;;  %v470_v7 = vmul.f32 2.0, %v3179_v30 }
  0x96   : > { %v367_v45 = vmul.f32 4.0, %v343_v43  ;;  %v366_v53 = vmul.f32 4.0, %v342_v51  ;;  %v3219_v58 = vmul.f32 2.0, %v343_v43  ;;  %v3235_v62 = vmul.f32 2.0, %v342_v51 }
  0x97   : > { %v3141_v21 = vld [vmem:[#allocation2 + $0x50] sm:$0xff]  ;;  %v3157_v25 = vld [vmem:[#allocation2 + $0x48] sm:$0xff] }
  0x98   : > { %306 = vrot.lane.b32.xlu0 %v3139_v20, %s3006_s20  ;;  %320 = vrot.lane.b32.xlu1 %v3141_v21, %s3006_s20  ;;  %v3173_v29 = vld [vmem:[#allocation2 + $0x52] sm:$0xff]  ;;  %v3188_v33 = vld [vmem:[#allocation2 + $0x4a] sm:$0xff]  ;;  %v257_v37 = vmul.f32 2.0, %v3141_v21  ;;  %v256_v42 = vmul.f32 2.0, %v3157_v25 }
  0x99   : > { %4920 = vst [vmem:[#allocation5_spill] sm:$0xff] %v3188_v33  ;;  %v345_v48 = vld [vmem:[#allocation2 + $0x51] sm:$0xff]  ;;  %v344_v55 = vld [vmem:[#allocation2 + $0x49] sm:$0xff]  ;;  %v473_v6 = vmul.f32 2.0, %v3173_v29  ;;  %v472_v9 = vmul.f32 2.0, %v3188_v33 }
  0x9a   : > { %v369_v50 = vmul.f32 4.0, %v345_v48  ;;  %v368_v57 = vmul.f32 4.0, %v344_v55  ;;  %v3229_v61 = vmul.f32 2.0, %v345_v48  ;;  %v3244_v2 = vmul.f32 2.0, %v344_v55 }
  0x9c   : > { %314 = vrot.lane.b32.xlu0 %v3147_v22, %s3006_s20  ;;  %310 = vrot.lane.b32.xlu1 %v3149_v23, %s3006_s20 }
  0xa0   : > { %524 = vrot.lane.b32.xlu0 %v3155_v24, %s3006_s20  ;;  %318 = vrot.lane.b32.xlu1 %v3157_v25, %s3006_s20 }
  0xa4   : > { %532 = vrot.lane.b32.xlu0 %v3163_v26, %s3006_s20  ;;  %528 = vrot.lane.b32.xlu1 %v3165_v27, %s3006_s20 }
  0xa8   : > { %522 = vrot.lane.b32.xlu0 %v3171_v28, %s3006_s20  ;;  %536 = vrot.lane.b32.xlu1 %v3173_v29, %s3006_s20 }
  0xac   : > { %530 = vrot.lane.b32.xlu0 %v3179_v30, %s3006_s20  ;;  %526 = vrot.lane.b32.xlu1 %v3181_v31, %s3006_s20 }
  0xb0   : > { %268 = vrot.lane.b32.xlu0 %v251_v32, %s3007_s21  ;;  %534 = vrot.lane.b32.xlu1 %v3188_v33, %s3006_s20 }
  0xb4   : > { %276 = vrot.lane.b32.xlu0 %v255_v34, %s3007_s21  ;;  %272 = vrot.lane.b32.xlu1 %v253_v35, %s3007_s21 }
  0xb8   : > { %266 = vrot.lane.b32.xlu0 %v250_v36, %s3007_s21  ;;  %280 = vrot.lane.b32.xlu1 %v257_v37, %s3007_s21 }
  0xbc   : > { %274 = vrot.lane.b32.xlu0 %v254_v38, %s3007_s21  ;;  %270 = vrot.lane.b32.xlu1 %v252_v39, %s3007_s21 }
  0xc0   : > { %380 = vrot.lane.b32.xlu0 %v363_v41, %s3007_s21  ;;  %278 = vrot.lane.b32.xlu1 %v256_v42, %s3007_s21 }
  0xc4   : > { %388 = vrot.lane.b32.xlu0 %v367_v45, %s3007_s21  ;;  %384 = vrot.lane.b32.xlu1 %v365_v46, %s3007_s21 }
  0xc8   : > { %378 = vrot.lane.b32.xlu0 %v362_v49, %s3007_s21  ;;  %392 = vrot.lane.b32.xlu1 %v369_v50, %s3007_s21 }
  0xcc   : > { %386 = vrot.lane.b32.xlu0 %v366_v53, %s3007_s21  ;;  %382 = vrot.lane.b32.xlu1 %v364_v54, %s3007_s21 }
  0xd0   : > { %420 = vrot.lane.b32.xlu0 %v3214_v56, %s3006_s20  ;;  %390 = vrot.lane.b32.xlu1 %v368_v57, %s3007_s21 }
  0xd4   : > { %428 = vrot.lane.b32.xlu0 %v3219_v58, %s3006_s20  ;;  %424 = vrot.lane.b32.xlu1 %v3221_v59, %s3006_s20 }
  0xd8   : > { %418 = vrot.lane.b32.xlu0 %v3227_v60, %s3006_s20  ;;  %432 = vrot.lane.b32.xlu1 %v3229_v61, %s3006_s20 }
  0xdc   : > { %426 = vrot.lane.b32.xlu0 %v3235_v62, %s3006_s20  ;;  %422 = vrot.lane.b32.xlu1 %v3237_v63, %s3006_s20 }
  0xe0   : > { %484 = vrot.lane.b32.xlu0 %v467_v1, %s3007_s21  ;;  %430 = vrot.lane.b32.xlu1 %v3244_v2, %s3006_s20 }
  0xe4   : > { %492 = vrot.lane.b32.xlu0 %v471_v3, %s3007_s21  ;;  %488 = vrot.lane.b32.xlu1 %v469_v4, %s3007_s21 }
  0xe8   : > { %482 = vrot.lane.b32.xlu0 %v466_v5, %s3007_s21  ;;  %496 = vrot.lane.b32.xlu1 %v473_v6, %s3007_s21 }
  0xec   : > { %490 = vrot.lane.b32.xlu0 %v470_v7, %s3007_s21  ;;  %486 = vrot.lane.b32.xlu1 %v468_v8, %s3007_s21 }
  0xf0   : > { %494 = vrot.lane.b32.xlu1 %v472_v9, %s3007_s21 }
 0x102   : > { %v309_v10 = vpop.permute.xlu0 %308  ;;  %v313_v11 = vpop.permute.xlu1 %312 }
 0x106   : > { %v317_v12 = vpop.permute.xlu0 %316 }
 0x10a   : > { %v321_v13 = vpop.permute.xlu1 %320  ;;  %v307_v14 = vpop.permute.xlu0 %306 }
 0x10e   : > { %v311_v15 = vpop.permute.xlu1 %310  ;;  %v315_v16 = vpop.permute.xlu0 %314 }
 0x112   : > { %v3263_v32 = vpop.permute.xlu1 %318  ;;  %v3265_v34 = vpop.permute.xlu0 %524 }
 0x116   : > { %v3267_v35 = vpop.permute.xlu1 %528  ;;  %v3269_v36 = vpop.permute.xlu0 %532 }
 0x11a   : > { %v3271_v37 = vpop.permute.xlu1 %536  ;;  %v3273_v38 = vpop.permute.xlu0 %522 }
 0x11b   : > { %4921 = vst [vmem:[#allocation6_spill] sm:$0xff] %v3271_v37  ;;  %4922 = vst [vmem:[#allocation7_spill] sm:$0xff] %v3273_v38 }
 0x11e   : > { %v3275_v39 = vpop.permute.xlu1 %526  ;;  %v3277_v40 = vpop.permute.xlu0 %530 }
 0x11f   : > { %4923 = vst [vmem:[#allocation8_spill] sm:$0xff] %v3275_v39  ;;  %4924 = vst [vmem:[#allocation9_spill] sm:$0xff] %v3277_v40 }
 0x122   : > { %v3279_v41 = vpop.permute.xlu1 %534  ;;  %v269_v42 = vpop.permute.xlu0 %268 }
 0x123   : > { %4925 = vst [vmem:[#allocation10_spill] sm:$0xff] %v3279_v41  ;;  %v291_v1 = vadd.f32 %v269_v42, %v3127_v18 }
 0x125   : > { %v331_v6 = vadd.f32 %v309_v10, %v291_v1 }
 0x126   : > { %v273_v43 = vpop.permute.xlu1 %272  ;;  %v277_v44 = vpop.permute.xlu0 %276 }
 0x127   : > { %v293_v5 = vadd.f32 %v273_v43, %v3125_v17  ;;  %v295_v7 = vadd.f32 %v277_v44, %v3135_v19  ;;  %v355_v39 = vadd.f32 %v3214_v56, %v331_v6 }
 0x129   : > { %v333_v0 = vadd.f32 %v313_v11, %v293_v5  ;;  %v335_v41 = vadd.f32 %v317_v12, %v295_v7 }
 0x12a   : > { %v281_v45 = vpop.permute.xlu1 %280  ;;  %v267_v46 = vpop.permute.xlu0 %266 }
 0x12b   : > { %v297_v33 = vadd.f32 %v281_v45, %v3141_v21  ;;  %v290_v40 = vadd.f32 %v267_v46, %v3139_v20  ;;  %v357_v10 = vadd.f32 %v3221_v59, %v333_v0  ;;  %v359_v11 = vadd.f32 %v3219_v58, %v335_v41 }
 0x12d   : > { %v337_v19 = vadd.f32 %v321_v13, %v297_v33  ;;  %v330_v43 = vadd.f32 %v307_v14, %v290_v40 }
 0x12e   : > { %v271_v47 = vpop.permute.xlu1 %270  ;;  %v275_v48 = vpop.permute.xlu0 %274 }
 0x12f   : > { %v292_v42 = vadd.f32 %v271_v47, %v3149_v23  ;;  %v294_v17 = vadd.f32 %v275_v48, %v3147_v22  ;;  %v361_v23 = vadd.f32 %v3229_v61, %v337_v19  ;;  %v354_v22 = vadd.f32 %v3227_v60, %v330_v43  ;;  %v4928_v43 = vld [vmem:[#allocation8_spill] sm:$0xff] }
 0x131   : > { %v332_v46 = vadd.f32 %v311_v15, %v292_v42  ;;  %v334_v56 = vadd.f32 %v315_v16, %v294_v17 }
 0x132   : > { %v279_v49 = vpop.permute.xlu1 %278  ;;  %v381_v50 = vpop.permute.xlu0 %380 }
 0x133   : > { %v403_v18 = vadd.f32 %v381_v50, %v355_v39  ;;  %v296_v1 = vadd.f32 %v279_v49, %v3157_v25  ;;  %v356_v15 = vadd.f32 %v3237_v63, %v332_v46  ;;  %v358_v16 = vadd.f32 %v3235_v62, %v334_v56  ;;  %v4931_v56 = vld [vmem:[#allocation10_spill] sm:$0xff] }
 0x135   : > { %v336_v40 = vadd.f32 %v3263_v32, %v296_v1 }
 0x136   : > { %v385_v51 = vpop.permute.xlu1 %384  ;;  %v389_v52 = vpop.permute.xlu0 %388 }
 0x137   : > { %v405_v44 = vadd.f32 %v385_v51, %v357_v10  ;;  %v407_v20 = vadd.f32 %v389_v52, %v359_v11  ;;  %v360_v32 = vadd.f32 %v3244_v2, %v336_v40 }
 0x13a   : > { %v393_v53 = vpop.permute.xlu1 %392  ;;  %v379_v54 = vpop.permute.xlu0 %378 }
 0x13b   : > { %v409_v58 = vadd.f32 %v393_v53, %v361_v23  ;;  %v402_v13 = vadd.f32 %v379_v54, %v354_v22 }
 0x13e   : > { %v383_v55 = vpop.permute.xlu1 %382  ;;  %v387_v57 = vpop.permute.xlu0 %386 }
 0x13f   : > { %v406_v49 = vadd.f32 %v387_v57, %v358_v16 }
 0x142   : > { %v391_v3 = vpop.permute.xlu1 %390  ;;  %v421_v4 = vpop.permute.xlu0 %420 }
 0x143   : > { %v443_v12 = vadd.f32 %v421_v4, %v403_v18  ;;  %v4927_v18 = vld [vmem:[#allocation7_spill] sm:$0xff] }
 0x145   : > { %v459_v0 = vadd.f32 %v3155_v24, %v443_v12  ;;  %v404_v24 = vadd.f32 %v383_v55, %v356_v15 }
 0x146   : > { %v425_v8 = vpop.permute.xlu1 %424  ;;  %v429_v9 = vpop.permute.xlu0 %428 }
 0x147   : > { %v445_v39 = vadd.f32 %v425_v8, %v405_v44  ;;  %v447_v47 = vadd.f32 %v429_v9, %v407_v20  ;;  %v4926_v9 = vld [vmem:[#allocation6_spill] sm:$0xff] }
 0x149   : > { %v461_v25 = vadd.f32 %v3165_v27, %v445_v39  ;;  %v463_v48 = vadd.f32 %v3163_v26, %v447_v47 }
 0x14a   : > { %v433_v38 = vpop.permute.xlu1 %432  ;;  %v419_v37 = vpop.permute.xlu0 %418 }
 0x14b   : > { %v449_v41 = vadd.f32 %v433_v38, %v409_v58  ;;  %v442_v61 = vadd.f32 %v419_v37, %v402_v13  ;;  %v408_v37 = vadd.f32 %v391_v3, %v360_v32 }
 0x14d   : > { %v458_v26 = vadd.f32 %v3171_v28, %v442_v61 }
 0x14e   : > { %v423_v21 = vpop.permute.xlu1 %422  ;;  %v427_v45 = vpop.permute.xlu0 %426 }
 0x14f   : > { %v444_v63 = vadd.f32 %v423_v21, %v404_v24  ;;  %v446_v4 = vadd.f32 %v427_v45, %v406_v49 }
 0x151   : > { %v460_v2 = vadd.f32 %v3181_v31, %v444_v63  ;;  %v462_v8 = vadd.f32 %v3179_v30, %v446_v4  ;;  %v4929_v31 = vld [vmem:[#allocation9_spill] sm:$0xff] }
 0x152   : > { %v431_v33 = vpop.permute.xlu1 %430  ;;  %v485_v59 = vpop.permute.xlu0 %484  ;;  %v4930_v30 = vld [vmem:[#allocation5_spill] sm:$0xff] }
 0x153   : > { %v507_v14 = vadd.f32 %v485_v59, %v459_v0  ;;  %v3008_v0 = vmov 1983009808   ;;  %v627_v59 = vlaneseq }
 0x155   : > { %v547_v60 = vadd.f32 %v3265_v34, %v507_v14  ;;  %v465_v34 = vadd.f32 %v3173_v29, %v449_v41  ;;  %v3328_v15 = vshrl.u32 %v627_v59, 7 }
 0x156   : > { %v489_v50 = vpop.permute.xlu1 %488  ;;  %v493_v51 = vpop.permute.xlu0 %492 }
 0x157   : > { %v509_v52 = vadd.f32 %v489_v50, %v461_v25  ;;  %v511_v53 = vadd.f32 %v493_v51, %v463_v48  ;;  %v567_v54 = vmul.f32 0.0625, %v547_v60 }
 0x159   : > { %v549_v62 = vadd.f32 %v3267_v35, %v509_v52  ;;  %v551_v27 = vadd.f32 %v3269_v36, %v511_v53  ;;  %584 = vrot.lane.b32.xlu0 %v567_v54, %s3005_s19  ;;  %v448_v35 = vadd.f32 %v431_v33, %v408_v37  ;;  %v625_v33 = vunpack.c.l.s4 %v3008_v0 }
 0x15a   : > { %v497_v38 = vpop.permute.xlu1 %496  ;;  %v483_v55 = vpop.permute.xlu0 %482 }
 0x15b   : > { %v513_v57 = vadd.f32 %v497_v38, %v465_v34  ;;  %v506_v5 = vadd.f32 %v483_v55, %v458_v26  ;;  %v569_v6 = vmul.f32 0.0625, %v549_v62  ;;  %v571_v7 = vmul.f32 0.0625, %v551_v27 }
 0x15c   : > { %v464_v44 = vadd.f32 %v4930_v30, %v448_v35  ;;  %v626_v40 = vunpack.c.0.s8 %v625_v33 }
 0x15d   : > { %v553_v36 = vadd.f32 %v4926_v9, %v513_v57  ;;  %v546_v42 = vadd.f32 %v4927_v18, %v506_v5  ;;  %588 = vrot.lane.b32.xlu1 %v569_v6, %s3005_s19  ;;  %592 = vrot.lane.b32.xlu0 %v571_v7, %s3005_s19 }
 0x15e   : > { %v487_v28 = vpop.permute.xlu1 %486  ;;  %v491_v29 = vpop.permute.xlu0 %490  ;;  %v3343_v52 = vsub.s32 %v626_v40, %v3328_v15 }
 0x15f   : > { %v508_v3 = vadd.f32 %v487_v28, %v460_v2  ;;  %v510_v17 = vadd.f32 %v491_v29, %v462_v8  ;;  %v573_v10 = vmul.f32 0.0625, %v553_v36  ;;  %v566_v19 = vmul.f32 0.0625, %v546_v42 }
 0x161   : > { %v548_v11 = vadd.f32 %v4928_v43, %v508_v3  ;;  %v550_v12 = vadd.f32 %v4929_v31, %v510_v17  ;;  %596 = vrot.lane.b32.xlu1 %v573_v10, %s3005_s19  ;;  %582 = vrot.lane.b32.xlu0 %v566_v19, %s3005_s19 }
 0x162   : > { %v495_v21 = vpop.permute.xlu1 %494 }
 0x163   : > { %v512_v45 = vadd.f32 %v495_v21, %v464_v44  ;;  %v568_v20 = vmul.f32 0.0625, %v548_v11  ;;  %v570_v46 = vmul.f32 0.0625, %v550_v12 }
 0x165   : > { %v552_v1 = vadd.f32 %v4931_v56, %v512_v45  ;;  %586 = vrot.lane.b32.xlu1 %v568_v20, %s3005_s19  ;;  %590 = vrot.lane.b32.xlu0 %v570_v46, %s3005_s19 }
 0x167   : > { %v572_v39 = vmul.f32 0.0625, %v552_v1 }
 0x169   : > { %594 = vrot.lane.b32.xlu1 %v572_v39, %s3005_s19 }
 0x1cb   : > { %v585_v23 = vpop.permute.xlu0 %584 }
 0x1cc   : > { %607 = vst.msk [vmem:[#allocation3 + $0x9] sm:$0xff] %vm225_vm2, %v585_v23 }
 0x1cf   : > { %v589_v22 = vpop.permute.xlu1 %588  ;;  %v593_v47 = vpop.permute.xlu0 %592 }
 0x1d0   : > { %609 = vst.msk [vmem:[#allocation3 + $0x21] sm:$0xff] %vm225_vm2, %v589_v22  ;;  %611 = vst.msk [vmem:[#allocation3 + $0x39] sm:$0xff] %vm225_vm2, %v593_v47 }
 0x1d3   : > { %v597_v58 = vpop.permute.xlu1 %596  ;;  %v583_v13 = vpop.permute.xlu0 %582  ;;  %v2280_v14 = vld [vmem:[#allocation3 + $0xa] sm:$0xff] }
 0x1d4   : > { %613 = vst.msk [vmem:[#allocation3 + $0x51] sm:$0xff] %vm225_vm2, %v597_v58  ;;  %606 = vst.msk [vmem:[#allocation3 + $0x1] sm:$0xff] %vm225_vm2, %v583_v13  ;;  %2297 = vrot.lane.b32.xlu0 %v2280_v14, %s3007_s21  ;;  %v3334_v60 = vld [vmem:[#allocation3 + $0x9] sm:$0xff] }
 0x1d7   : > { %v587_v16 = vpop.permute.xlu1 %586  ;;  %v591_v25 = vpop.permute.xlu0 %590  ;;  %v2282_v41 = vld [vmem:[#allocation3 + $0x22] sm:$0xff]  ;;  %v2284_v61 = vld [vmem:[#allocation3 + $0x3a] sm:$0xff] }
 0x1d8   : > { %608 = vst.msk [vmem:[#allocation3 + $0x19] sm:$0xff] %vm225_vm2, %v587_v16  ;;  %610 = vst.msk [vmem:[#allocation3 + $0x31] sm:$0xff] %vm225_vm2, %v591_v25  ;;  %2301 = vrot.lane.b32.xlu1 %v2282_v41, %s3007_s21  ;;  %2305 = vrot.lane.b32.xlu0 %v2284_v61, %s3007_s21  ;;  %v3336_v48 = vld [vmem:[#allocation3 + $0x39] sm:$0xff]  ;;  %v2139_v24 = vcombine.low %v2280_v14, %v2284_v61  ;;  %v2140_v49 = vcombine.high %v2280_v14, %v2284_v61  ;;  %v3345_v32 = vld [vmem:[#allocation3 + $0x21] sm:$0xff] }
 0x1d9   : > { %v1415_v50 = vcombine.low %v3334_v60, %v3336_v48  ;;  %v1416_v51 = vcombine.high %v3334_v60, %v3336_v48 }
 0x1da   : > { %v3357_v26 = vrot.slane %v2139_v24, %v3343_v52  ;;  %v3372_v7 = vrot.slane %v2140_v49, %v3343_v52  ;;  %v3009_v24 = vmov 1934713408  }
 0x1db   : > { %v595_v53 = vpop.permute.xlu1 %594  ;;  %v2286_v54 = vld [vmem:[#allocation3 + $0x52] sm:$0xff]  ;;  %v2279_v57 = vld [vmem:[#allocation3 + $0x2] sm:$0xff]  ;;  %v3369_v6 = vrot.slane %v1415_v50, %v3343_v52  ;;  %v3388_v3 = vrot.slane %v1416_v51, %v3343_v52  ;;  %v657_v49 = vunpack.c.l.s4 %v3009_v24 }
 0x1dc   : > { %v3347_v63 = vld [vmem:[#allocation3 + $0x51] sm:$0xff]  ;;  %612 = vst.msk [vmem:[#allocation3 + $0x49] sm:$0xff] %vm225_vm2, %v595_v53  ;;  %2309 = vrot.lane.b32.xlu1 %v2286_v54, %s3007_s21  ;;  %2551 = vrot.lane.b32.xlu0 %v2280_v14, %s3006_s20  ;;  %v2155_v4 = vcombine.low %v2282_v41, %v2286_v54  ;;  %v2156_v27 = vcombine.high %v2282_v41, %v2286_v54  ;;  %v3392_v10 = vld [vmem:[#allocation3 + $0x1] sm:$0xff] }
 0x1dd   : > { %v1431_v62 = vcombine.low %v3345_v32, %v3347_v63  ;;  %v1432_v34 = vcombine.high %v3345_v32, %v3347_v63  ;;  %v3470_v14 = vld [vmem:[#allocation3 + $0x8] sm:$0xff]  ;;  %v658_v53 = vunpack.c.0.s8 %v657_v49 }
 0x1de   : > { %v3360_v37 = vrot.slane %v2155_v4, %v3343_v52  ;;  %v3366_v55 = vrot.slane %v2156_v27, %v3343_v52 }
 0x1df   : > { %v3363_v38 = vrot.slane %v1431_v62, %v3343_v52  ;;  %v2283_v5 = vld [vmem:[#allocation3 + $0x32] sm:$0xff]  ;;  %v3383_v18 = vrot.slane %v1432_v34, %v3343_v52  ;;  %v2281_v42 = vld [vmem:[#allocation3 + $0x1a] sm:$0xff]  ;;  %v3526_v62 = vsub.s32 %v658_v53, %v3328_v15 }
 0x1e0   : > { %2555 = vrot.lane.b32.xlu1 %v2282_v41, %s3006_s20  ;;  %2559 = vrot.lane.b32.xlu0 %v2284_v61, %s3006_s20  ;;  %v2071_v2 = vcombine.low %v2279_v57, %v2283_v5  ;;  %v2072_v8 = vcombine.high %v2279_v57, %v2283_v5  ;;  %v2172_v35 = vcombine.high %v3357_v26, %v3360_v37  ;;  %v3385_v29 = vld [vmem:[#allocation3 + $0x31] sm:$0xff]  ;;  %v1811_v1 = vld [vmem:[#allocation3 + $0x19] sm:$0xff] }
 0x1e1   : > { %v1448_v9 = vcombine.high %v3369_v6, %v3363_v38  ;;  %v2187_v36 = vcombine.low %v3372_v7, %v3366_v55  ;;  %v1463_v43 = vcombine.low %v3388_v3, %v3383_v18  ;;  %v2188_v12 = vcombine.high %v3372_v7, %v3366_v55  ;;  %v3475_v40 = vld [vmem:[#allocation3 + $0x20] sm:$0xff]  ;;  %v3477_v16 = vld [vmem:[#allocation3 + $0x38] sm:$0xff] }
 0x1e2   : > { %v3397_v11 = vrot.slane %v2071_v2, %v3343_v52  ;;  %v1348_v30 = vcombine.high %v3392_v10, %v3385_v29  ;;  %v3407_v44 = vrot.slane %v2072_v8, %v3343_v52  ;;  %v1447_v23 = vcombine.low %v3369_v6, %v3363_v38  ;;  %v3493_v41 = vld [vmem:[#allocation3] sm:$0xff]  ;;  %v3499_v61 = vld [vmem:[#allocation3 + $0x18] sm:$0xff] }
 0x1e3   : > { %v2285_v28 = vld [vmem:[#allocation3 + $0x4a] sm:$0xff]  ;;  %v1464_v59 = vcombine.high %v3388_v3, %v3383_v18  ;;  %v2171_v13 = vcombine.low %v3357_v26, %v3360_v37  ;;  %v691_v15 = vcombine.high %v3470_v14, %v3477_v16  ;;  %v3607_v49 = vrot.slane %v1463_v43, %v3526_v62 }
 0x1e4   : > { %2563 = vrot.lane.b32.xlu1 %v2286_v54, %s3006_s20  ;;  %2295 = vrot.lane.b32.xlu0 %v2279_v57, %s3007_s21  ;;  %v2087_v17 = vcombine.low %v2281_v42, %v2285_v28  ;;  %v2088_v19 = vcombine.high %v2281_v42, %v2285_v28  ;;  %v1815_v46 = vld [vmem:[#allocation3 + $0x49] sm:$0xff]  ;;  %v3427_v47 = vrot.slane %v1348_v30, %v3343_v52 }
 0x1e5   : > { %v1364_v39 = vcombine.high %v1811_v1, %v1815_v46  ;;  %v3483_v25 = vld [vmem:[#allocation3 + $0x50] sm:$0xff]  ;;  %v1363_v50 = vcombine.low %v1811_v1, %v1815_v46  ;;  %v1347_v54 = vcombine.low %v3392_v10, %v3385_v29  ;;  %v3624_v43 = vrot.slane %v2188_v12, %v3526_v62 }
 0x1e6   : > { %v3400_v31 = vrot.slane %v2087_v17, %v3343_v52  ;;  %v3410_v21 = vrot.slane %v2088_v19, %v3343_v52  ;;  %v707_v8 = vcombine.high %v3475_v40, %v3483_v25  ;;  %v705_v17 = vrot.slane %v691_v15, %v3343_v52 }
 0x1e7   : > { %v3430_v0 = vrot.slane %v1364_v39, %v3343_v52  ;;  %v1355_v27 = vrot.slane %v1347_v54, %v3343_v52  ;;  %v3566_v19 = vrot.slane %v2172_v35, %v3526_v62  ;;  %v3592_v39 = vrot.slane %v2187_v36, %v3526_v62 }
 0x1e8   : > { %2299 = vrot.lane.b32.xlu1 %v2281_v42, %s3007_s21  ;;  %2303 = vrot.lane.b32.xlu0 %v2283_v5, %s3007_s21  ;;  %v2104_v45 = vcombine.high %v3397_v11, %v3400_v31  ;;  %v2119_v20 = vcombine.low %v3407_v44, %v3410_v21  ;;  %v2103_v56 = vcombine.low %v3397_v11, %v3400_v31  ;;  %v4934_v36 = vmov 0.0  }
 0x1e9   : > { %v2120_v22 = vcombine.high %v3407_v44, %v3410_v21  ;;  %v1395_v33 = vcombine.low %v3427_v47, %v3430_v0  ;;  %v1396_v58 = vcombine.high %v3427_v47, %v3430_v0  ;;  %v3636_v31 = vrot.slane %v1447_v23, %v3526_v62 }
 0x1ea   : > { %v690_v55 = vcombine.low %v3470_v14, %v3477_v16 }
 0x1eb   : > { %4936 = vst [vmem:[#allocation9_spill] sm:$0xff] %v3636_v31  ;;  %v3653_v38 = vrot.slane %v1395_v33, %v3526_v62  ;;  %v1479_v6 = vcombine.high %v3636_v31, %v4934_v36  ;;  %v3673_v33 = vrot.slane %v2120_v22, %v3526_v62  ;;  %v3727_v18 = vrot.slane %v1396_v58, %v3526_v62 }
 0x1ec   : > { %2307 = vrot.lane.b32.xlu1 %v2285_v28, %s3007_s21  ;;  %2549 = vrot.lane.b32.xlu0 %v2279_v57, %s3006_s20  ;;  %v3534_v57 = vrot.slane %v2104_v45, %v3526_v62 }
 0x1ee   : > { %v2136_v21 = vcombine.high %v3534_v57, %v4934_v36 }
 0x1f0   : > { %2553 = vrot.lane.b32.xlu1 %v2281_v42, %s3006_s20  ;;  %2557 = vrot.lane.b32.xlu0 %v2283_v5, %s3006_s20 }
 0x1f4   : > { %2561 = vrot.lane.b32.xlu1 %v2285_v28, %s3006_s20  ;;  %1827 = vrot.lane.b32.xlu0 %v3334_v60, %s3006_s20 }
 0x1f8   : > { %1831 = vrot.lane.b32.xlu1 %v3345_v32, %s3006_s20  ;;  %1835 = vrot.lane.b32.xlu0 %v3336_v48, %s3006_s20 }
 0x1fc   : > { %1839 = vrot.lane.b32.xlu1 %v3347_v63, %s3006_s20  ;;  %1825 = vrot.lane.b32.xlu0 %v3392_v10, %s3006_s20 }
 0x200   : > { %1829 = vrot.lane.b32.xlu1 %v1811_v1, %s3006_s20  ;;  %1833 = vrot.lane.b32.xlu0 %v3385_v29, %s3006_s20 }
 0x204   : > { %1837 = vrot.lane.b32.xlu1 %v1815_v46, %s3006_s20  ;;  %1579 = vrot.lane.b32.xlu0 %v3334_v60, %s3007_s21  ;;  %v3501_v60 = vld [vmem:[#allocation3 + $0x30] sm:$0xff] }
 0x208   : > { %1583 = vrot.lane.b32.xlu1 %v3345_v32, %s3007_s21  ;;  %1587 = vrot.lane.b32.xlu0 %v3336_v48, %s3007_s21  ;;  %v3503_v48 = vld [vmem:[#allocation3 + $0x48] sm:$0xff]  ;;  %v622_v32 = vcombine.low %v3493_v41, %v3501_v60 }
 0x209   : > { %v638_v51 = vcombine.low %v3499_v61, %v3503_v48  ;;  %v639_v22 = vcombine.high %v3499_v61, %v3503_v48 }
 0x20a   : > { %v630_v34 = vrot.slane %v622_v32, %v3343_v52  ;;  %v706_v32 = vcombine.low %v3475_v40, %v3483_v25 }
 0x20b   : > { %v646_v4 = vrot.slane %v638_v51, %v3343_v52  ;;  %v3615_v51 = vrot.slane %v2103_v56, %v3526_v62 }
 0x20c   : > { %1591 = vrot.lane.b32.xlu1 %v3347_v63, %s3007_s21  ;;  %1577 = vrot.lane.b32.xlu0 %v3392_v10, %s3007_s21  ;;  %v1371_v63 = vrot.slane %v1363_v50, %v3343_v52  ;;  %v3560_v10 = vrot.slane %v2119_v20, %v3526_v62  ;;  %v3579_v20 = vrot.slane %v1448_v9, %v3526_v62 }
 0x20d   : > { %v655_v2 = vcombine.high %v630_v34, %v646_v4  ;;  %v654_v35 = vcombine.low %v630_v34, %v646_v4  ;;  %4935 = vst [vmem:[#allocation8_spill] sm:$0xff] %v3615_v51  ;;  %v2135_v11 = vcombine.high %v3615_v51, %v4934_v36 }
 0x20e   : > { %v1380_v5 = vcombine.high %v1355_v27, %v1371_v63  ;;  %v1379_v56 = vcombine.low %v1355_v27, %v1371_v63  ;;  %v2137_v3 = vcombine.high %v3560_v10, %v4934_v36 }
 0x20f   : > { %v3548_v28 = vrot.slane %v655_v2, %v3526_v62  ;;  %v3595_v9 = vrot.slane %v654_v35, %v3526_v62 }
 0x210   : > { %1581 = vrot.lane.b32.xlu1 %v1811_v1, %s3007_s21  ;;  %1585 = vrot.lane.b32.xlu0 %v3385_v29, %s3007_s21  ;;  %v3545_v42 = vrot.slane %v1380_v5, %v3526_v62  ;;  %v721_v29 = vrot.slane %v707_v8, %v3343_v52  ;;  %v3658_v23 = vrot.slane %v1379_v56, %v3526_v62 }
 0x211   : > { %4933 = vst [vmem:[#allocation7_spill] sm:$0xff] %v3595_v9  ;;  %v686_v50 = vcombine.high %v3595_v9, %v4934_v36  ;;  %v623_v8 = vcombine.high %v3493_v41, %v3501_v60 }
 0x212   : > { %v738_v30 = vcombine.low %v705_v17, %v721_v29  ;;  %4937 = vst [vmem:[#allocation5_spill] sm:$0xff] %v3658_v23  ;;  %v1411_v63 = vcombine.high %v3658_v23, %v4934_v36 }
 0x214   : > { %1589 = vrot.lane.b32.xlu1 %v1815_v46, %s3007_s21  ;;  %855 = vrot.lane.b32.xlu0 %v3470_v14, %s3007_s21  ;;  %v3573_v45 = vrot.slane %v738_v30, %v3526_v62  ;;  %v739_v46 = vcombine.high %v705_v17, %v721_v29  ;;  %v1412_v17 = vcombine.high %v3545_v42, %v4934_v36 }
 0x216   : > { %v3586_v1 = vrot.slane %v739_v46, %v3526_v62  ;;  %v637_v46 = vrot.slane %v623_v8, %v3343_v52 }
 0x218   : > { %859 = vrot.lane.b32.xlu1 %v3475_v40, %s3007_s21  ;;  %863 = vrot.lane.b32.xlu0 %v3477_v16, %s3007_s21  ;;  %4932 = vst [vmem:[#allocation6_spill] sm:$0xff] %v3586_v1 }
 0x21c   : > { %867 = vrot.lane.b32.xlu1 %v3483_v25, %s3007_s21  ;;  %1109 = vrot.lane.b32.xlu0 %v3470_v14, %s3006_s20  ;;  %v698_v14 = vrot.slane %v690_v55, %v3343_v52 }
 0x220   : > { %1113 = vrot.lane.b32.xlu1 %v3475_v40, %s3006_s20  ;;  %1117 = vrot.lane.b32.xlu0 %v3477_v16, %s3006_s20  ;;  %v714_v40 = vrot.slane %v706_v32, %v3343_v52 }
 0x222   : > { %v723_v4 = vcombine.high %v698_v14, %v714_v40 }
 0x224   : > { %1121 = vrot.lane.b32.xlu1 %v3483_v25, %s3006_s20  ;;  %853 = vrot.lane.b32.xlu0 %v3493_v41, %s3007_s21  ;;  %v737_v44 = vrot.slane %v723_v4, %v3526_v62 }
 0x226   : > { %v755_v8 = vcombine.high %v737_v44, %v4934_v36 }
 0x228   : > { %857 = vrot.lane.b32.xlu1 %v3499_v61, %s3007_s21  ;;  %861 = vrot.lane.b32.xlu0 %v3501_v60, %s3007_s21 }
 0x22c   : > { %865 = vrot.lane.b32.xlu1 %v3503_v48, %s3007_s21  ;;  %1107 = vrot.lane.b32.xlu0 %v3493_v41, %s3006_s20  ;;  %v653_v41 = vrot.slane %v639_v22, %v3343_v52 }
 0x22e   : > { %v671_v58 = vcombine.high %v637_v46, %v653_v41 }
 0x230   : > { %1111 = vrot.lane.b32.xlu1 %v3499_v61, %s3006_s20  ;;  %1115 = vrot.lane.b32.xlu0 %v3501_v60, %s3006_s20  ;;  %v722_v60 = vcombine.low %v698_v14, %v714_v40  ;;  %v3754_v55 = vrot.slane %v671_v58, %v3526_v62  ;;  %v3762_v40 = vrot.slane %v2171_v13, %v3526_v62 }
 0x231   : > { %v2204_v13 = vcombine.high %v3566_v19, %v4934_v36 }
 0x232   : > { %4941 = vst [vmem:[#allocation13_spill] sm:$0xff] %v3754_v55  ;;  %4942 = vst [vmem:[#allocation14_spill] sm:$0xff] %v3762_v40  ;;  %v2203_v4 = vcombine.high %v3762_v40, %v4934_v36 }
 0x234   : > { %1119 = vrot.lane.b32.xlu1 %v3503_v48, %s3006_s20  ;;  %2212 = vrot.lane.b32.xlu0 %v3534_v57, %s3010_s22  ;;  %v1478_v48 = vrot.slane %v1464_v59, %v3526_v62  ;;  %v670_v59 = vcombine.low %v637_v46, %v653_v41 }
 0x236   : > { %v3742_v47 = vrot.slane %v670_v59, %v3526_v62  ;;  %v2138_v59 = vcombine.high %v3673_v33, %v4934_v36 }
 0x238   : > { %1488 = vrot.lane.b32.xlu0 %v3545_v42, %s3010_s22  ;;  %763 = vrot.lane.b32.xlu1 %v3548_v28, %s3010_s22  ;;  %v3732_v42 = vrot.slane %v722_v60, %v3526_v62 }
 0x23a   : > { %4940 = vst [vmem:[#allocation12_spill] sm:$0xff] %v3732_v42  ;;  %v754_v0 = vcombine.high %v3732_v42, %v4934_v36 }
 0x23c   : > { %2220 = vrot.lane.b32.xlu0 %v3560_v10, %s3011_s23  ;;  %2240 = vrot.lane.b32.xlu1 %v3566_v19, %s3010_s22 }
 0x240   : > { %799 = vrot.lane.b32.xlu0 %v3573_v45, %s3011_s23  ;;  %1516 = vrot.lane.b32.xlu1 %v3579_v20, %s3010_s22 }
 0x244   : > { %807 = vrot.lane.b32.xlu0 %v3586_v1, %s3012_s24  ;;  %2248 = vrot.lane.b32.xlu1 %v3592_v39, %s3011_s23 }
 0x246   : > { %v3601_v24 = vpop.permute.xlu0 %2297 }
 0x248   : > { %1524 = vrot.lane.b32.xlu1 %v3607_v49, %s3011_s23  ;;  %759 = vrot.lane.b32.xlu0 %v686_v50, %s3013_s25 }
 0x24a   : > { %v3626_v53 = vpop.permute.xlu1 %2301  ;;  %v3628_v54 = vpop.permute.xlu0 %2305 }
 0x24c   : > { %2256 = vrot.lane.b32.xlu1 %v3624_v43, %s3012_s24  ;;  %2208 = vrot.lane.b32.xlu0 %v2135_v11, %s3013_s25 }
 0x24e   : > { %v3645_v7 = vpop.permute.xlu1 %2309  ;;  %v3647_v12 = vpop.permute.xlu0 %2551 }
 0x250   : > { %1496 = vrot.lane.b32.xlu1 %v3653_v38, %s3011_s23  ;;  %1512 = vrot.lane.b32.xlu0 %v1479_v6, %s3013_s25  ;;  %v1481_v6 = vcombine.high %v3607_v49, %v4934_v36  ;;  %v2206_v49 = vcombine.high %v3624_v43, %v4934_v36 }
 0x252   : > { %v3665_v16 = vpop.permute.xlu1 %2555  ;;  %v3667_v25 = vpop.permute.xlu0 %2559 }
 0x253   : > { %v2641_v27 = vcombine.low %v3647_v12, %v3667_v25 }
 0x254   : > { %2228 = vrot.lane.b32.xlu1 %v3673_v33, %s3012_s24  ;;  %1484 = vrot.lane.b32.xlu0 %v1411_v63, %s3013_s25 }
 0x255   : > { %v3698_v15 = vrot.slane %v2641_v27, %v3343_v52  ;;  %v1413_v27 = vcombine.high %v3653_v38, %v4934_v36 }
 0x256   : > { %v3682_v34 = vpop.permute.xlu1 %2563  ;;  %v3684_v5 = vpop.permute.xlu0 %2295 }
 0x257   : > { %v2657_v2 = vcombine.low %v3665_v16, %v3682_v34  ;;  %4938 = vst [vmem:[#allocation10_spill] sm:$0xff] %v3698_v15 }
 0x258   : > { %791 = vrot.lane.b32.xlu1 %v737_v44, %s3010_s22  ;;  %2216 = vrot.lane.b32.xlu0 %v2136_v21, %s3014_s26  ;;  %v1482_v44 = vcombine.high %v1478_v48, %v4934_v36 }
 0x259   : > { %v3701_v29 = vrot.slane %v2657_v2, %v3343_v52  ;;  %v1480_v2 = vcombine.high %v3579_v20, %v4934_v36  ;;  %v2205_v20 = vcombine.high %v3592_v39, %v4934_v36 }
 0x25a   : > { %v3703_v57 = vpop.permute.xlu1 %2299  ;;  %v3705_v61 = vpop.permute.xlu0 %2303 }
 0x25b   : > { %4939 = vst [vmem:[#allocation11_spill] sm:$0xff] %v3701_v29  ;;  %v2319_v19 = vcombine.low %v3684_v5, %v3705_v61 }
 0x25c   : > { %1532 = vrot.lane.b32.xlu1 %v1478_v48, %s3012_s24  ;;  %1492 = vrot.lane.b32.xlu0 %v1412_v17, %s3014_s26 }
 0x25d   : > { %v3813_v46 = vrot.slane %v2319_v19, %v3343_v52 }
 0x25e   : > { %v3719_v35 = vpop.permute.xlu1 %2307  ;;  %v3721_v50 = vpop.permute.xlu0 %2549 }
 0x25f   : > { %v2335_v43 = vcombine.low %v3703_v57, %v3719_v35 }
 0x260   : > { %1504 = vrot.lane.b32.xlu1 %v3727_v18, %s3012_s24  ;;  %2224 = vrot.lane.b32.xlu0 %v2137_v3, %s3015_s27 }
 0x261   : > { %v3801_v38 = vrot.slane %v2335_v43, %v3343_v52 }
 0x262   : > { %v3737_v11 = vpop.permute.xlu1 %2553  ;;  %v3739_v56 = vpop.permute.xlu0 %2557 }
 0x263   : > { %v2573_v3 = vcombine.low %v3721_v50, %v3739_v56 }
 0x264   : > { %771 = vrot.lane.b32.xlu1 %v3742_v47, %s3011_s23  ;;  %787 = vrot.lane.b32.xlu0 %v754_v0, %s3013_s25  ;;  %v2352_v0 = vcombine.high %v3813_v46, %v3801_v38 }
 0x266   : > { %v3749_v10 = vpop.permute.xlu1 %2561  ;;  %v3751_v32 = vpop.permute.xlu0 %1827 }
 0x267   : > { %v2589_v17 = vcombine.low %v3737_v11, %v3749_v10 }
 0x268   : > { %779 = vrot.lane.b32.xlu1 %v3754_v55, %s3012_s24  ;;  %1528 = vrot.lane.b32.xlu0 %v1481_v6, %s3015_s27 }
 0x269   : > { %v3824_v39 = vrot.slane %v2589_v17, %v3343_v52  ;;  %v687_v17 = vcombine.high %v3548_v28, %v4934_v36 }
 0x26a   : > { %v3767_v14 = vpop.permute.xlu1 %1831  ;;  %v3769_v63 = vpop.permute.xlu0 %1835 }
 0x26c   : > { %2236 = vrot.lane.b32.xlu1 %v2203_v4, %s3013_s25  ;;  %2260 = vrot.lane.b32.xlu0 %v2206_v49, %s3016_s28  ;;  %v756_v4 = vcombine.high %v3573_v45, %v4934_v36  ;;  %v3835_v49 = vrot.slane %v2573_v3, %v3343_v52 }
 0x26e   : > { %v3777_v26 = vpop.permute.xlu1 %1839  ;;  %v3779_v37 = vpop.permute.xlu0 %1825  ;;  %v2606_v45 = vcombine.high %v3835_v49, %v3824_v39 }
 0x270   : > { %2244 = vrot.lane.b32.xlu1 %v2204_v13, %s3014_s26  ;;  %1500 = vrot.lane.b32.xlu0 %v1413_v27, %s3015_s27  ;;  %v2403_v13 = vcombine.low %v3626_v53, %v3645_v7  ;;  %v2336_v27 = vcombine.high %v3703_v57, %v3719_v35  ;;  %v2387_v57 = vcombine.low %v3601_v24, %v3628_v54 }
 0x271   : > { %v2320_v35 = vcombine.high %v3684_v5, %v3705_v61  ;;  %v2590_v61 = vcombine.high %v3737_v11, %v3749_v10  ;;  %v2574_v10 = vcombine.high %v3721_v50, %v3739_v56  ;;  %v688_v56 = vcombine.high %v3742_v47, %v4934_v36 }
 0x272   : > { %v3789_v21 = vpop.permute.xlu1 %1829  ;;  %v3791_v22 = vpop.permute.xlu0 %1833  ;;  %v3874_v28 = vrot.slane %v2403_v13, %v3343_v52  ;;  %v1414_v13 = vcombine.high %v3727_v18, %v4934_v36  ;;  %v2404_v47 = vcombine.high %v3626_v53, %v3645_v7 }
 0x273   : > { %v1849_v33 = vcombine.low %v3779_v37, %v3791_v22  ;;  %v3932_v30 = vrot.slane %v2574_v10, %v3343_v52 }
 0x274   : > { %1520 = vrot.lane.b32.xlu1 %v1480_v2, %s3014_s26  ;;  %795 = vrot.lane.b32.xlu0 %v755_v8, %s3014_s26 }
 0x275   : > { %v3868_v3 = vrot.slane %v1849_v33, %v3343_v52 }
 0x276   : > { %v3805_v41 = vpop.permute.xlu1 %1837  ;;  %v3807_v60 = vpop.permute.xlu0 %1579 }
 0x277   : > { %v1865_v48 = vcombine.low %v3789_v21, %v3805_v41  ;;  %v1866_v23 = vcombine.high %v3789_v21, %v3805_v41 }
 0x278   : > { %2252 = vrot.lane.b32.xlu1 %v2205_v20, %s3015_s27  ;;  %1536 = vrot.lane.b32.xlu0 %v1482_v44, %s3016_s28  ;;  %v3859_v20 = vrot.slane %v2352_v0, %v3526_v62 }
 0x279   : > { %v3850_v2 = vrot.slane %v1865_v48, %v3343_v52 }
 0x27a   : > { %v3828_v58 = vpop.permute.xlu1 %1583  ;;  %v3830_v6 = vpop.permute.xlu0 %1587 }
 0x27b   : > { %v1669_v43 = vcombine.low %v3807_v60, %v3830_v6  ;;  %v1882_v48 = vcombine.high %v3868_v3, %v3850_v2 }
 0x27c   : > { %2232 = vrot.lane.b32.xlu1 %v2138_v59, %s3016_s28  ;;  %803 = vrot.lane.b32.xlu0 %v756_v4, %s3015_s27  ;;  %v3877_v59 = vrot.slane %v2336_v27, %v3343_v52  ;;  %v3896_v27 = vrot.slane %v2606_v45, %v3526_v62 }
 0x27d   : > { %v3880_v0 = vrot.slane %v1669_v43, %v3343_v52  ;;  %v3899_v43 = vrot.slane %v2387_v57, %v3343_v52  ;;  %v3916_v57 = vrot.slane %v2590_v61, %v3343_v52  ;;  %v1917_v61 = vcombine.low %v3751_v32, %v3769_v63 }
 0x27e   : > { %v3852_v8 = vpop.permute.xlu1 %1591  ;;  %v3854_v19 = vpop.permute.xlu0 %1577 }
 0x27f   : > { %v1685_v44 = vcombine.low %v3828_v58, %v3852_v8  ;;  %v2420_v18 = vcombine.high %v3899_v43, %v3874_v28  ;;  %v2621_v9 = vcombine.low %v3932_v30, %v3916_v57 }
 0x280   : > { %767 = vrot.lane.b32.xlu1 %v687_v17, %s3014_s26  ;;  %2460 = vrot.lane.b32.xlu0 %v3859_v20, %s3010_s22  ;;  %v3902_v17 = vrot.slane %v2320_v35, %v3343_v52  ;;  %v1933_v35 = vcombine.low %v3767_v14, %v3777_v26 }
 0x281   : > { %v3883_v5 = vrot.slane %v1685_v44, %v3343_v52  ;;  %v3946_v10 = vrot.slane %v2420_v18, %v3526_v62  ;;  %v2388_v18 = vcombine.high %v3601_v24, %v3628_v54  ;;  %v3982_v24 = vrot.slane %v2404_v47, %v3343_v52 }
 0x282   : > { %v3889_v4 = vpop.permute.xlu1 %1581  ;;  %v3891_v33 = vpop.permute.xlu0 %1585  ;;  %v2367_v45 = vcombine.low %v3902_v17, %v3877_v59  ;;  %v2642_v54 = vcombine.high %v3647_v12, %v3667_v25 }
 0x283   : > { %4943 = vst [vmem:[#allocation15_spill] sm:$0xff] %v3883_v5  ;;  %v1601_v55 = vcombine.low %v3854_v19, %v3891_v33  ;;  %4944 = vst [vmem:[#allocation16_spill] sm:$0xff] %v3946_v10  ;;  %v4002_v12 = vrot.slane %v2388_v18, %v3343_v52 }
 0x284   : > { %1508 = vrot.lane.b32.xlu1 %v1414_v13, %s3016_s28  ;;  %2714 = vrot.lane.b32.xlu0 %v3896_v27, %s3010_s22  ;;  %v3927_v13 = vrot.slane %v1882_v48, %v3526_v62  ;;  %v2674_v48 = vcombine.high %v3698_v15, %v3701_v29  ;;  %v3949_v1 = vrot.slane %v2367_v45, %v3526_v62 }
 0x285   : > { %v2658_v45 = vcombine.high %v3665_v16, %v3682_v34  ;;  %v3970_v15 = vrot.slane %v1917_v61, %v3343_v52  ;;  %v3975_v21 = vrot.slane %v1601_v55, %v3343_v52  ;;  %v3992_v55 = vrot.slane %v1866_v23, %v3343_v52 }
 0x286   : > { %v3920_v44 = vpop.permute.xlu1 %1589  ;;  %v3922_v50 = vpop.permute.xlu0 %855  ;;  %v3987_v16 = vrot.slane %v2674_v48, %v3526_v62  ;;  %v2435_v23 = vcombine.low %v4002_v12, %v3982_v24 }
 0x287   : > { %v1617_v11 = vcombine.low %v3889_v4, %v3920_v44  ;;  %v4005_v25 = vrot.slane %v2658_v45, %v3343_v52 }
 0x288   : > { %775 = vrot.lane.b32.xlu1 %v688_v56, %s3015_s27  ;;  %1990 = vrot.lane.b32.xlu0 %v3927_v13, %s3010_s22  ;;  %v3954_v56 = vrot.slane %v1933_v35, %v3343_v52  ;;  %v1850_v35 = vcombine.high %v3779_v37, %v3791_v22  ;;  %4945 = vst [vmem:[#allocation17_spill] sm:$0xff] %v3987_v16 }
 0x289   : > { %v3959_v53 = vrot.slane %v1617_v11, %v3343_v52  ;;  %v3999_v11 = vrot.slane %v2621_v9, %v3526_v62  ;;  %v4017_v9 = vrot.slane %v2642_v54, %v3343_v52  ;;  %v2368_v54 = vcombine.high %v3902_v17, %v3877_v59 }
 0x28a   : > { %v3961_v7 = vpop.permute.xlu1 %859  ;;  %v3963_v29 = vpop.permute.xlu0 %863  ;;  %v1950_v34 = vcombine.high %v3970_v15, %v3954_v56  ;;  %v4008_v61 = vrot.slane %v1850_v35, %v3343_v52  ;;  %v4042_v31 = vrot.slane %v2435_v23, %v3526_v62  ;;  %v1918_v59 = vcombine.high %v3751_v32, %v3769_v63 }
 0x28b   : > { %v1634_v37 = vcombine.high %v3975_v21, %v3959_v53  ;;  %v946_v17 = vcombine.high %v3922_v50, %v3963_v29  ;;  %v4067_v63 = vrot.slane %v2368_v54, %v3526_v62 }
 0x28c   : > { %2488 = vrot.lane.b32.xlu1 %v3946_v10, %s3010_s22  ;;  %2468 = vrot.lane.b32.xlu0 %v3949_v1, %s3011_s23  ;;  %v1897_v47 = vcombine.low %v4008_v61, %v3992_v55  ;;  %v4022_v45 = vrot.slane %v1950_v34, %v3526_v62  ;;  %v1934_v34 = vcombine.high %v3767_v14, %v3777_v26 }
 0x28d   : > { %v4025_v35 = vrot.slane %v1634_v37, %v3526_v62  ;;  %4947 = vst [vmem:[#allocation19_spill] sm:$0xff] %v4042_v31  ;;  %v2622_v26 = vcombine.high %v3932_v30, %v3916_v57  ;;  %v4087_v54 = vrot.slane %v946_v17, %v3343_v52 }
 0x28e   : > { %v3996_v22 = vpop.permute.xlu1 %867  ;;  %v1110_v41 = vpop.permute.xlu0 %1109  ;;  %4946 = vst [vmem:[#allocation18_spill] sm:$0xff] %v4022_v45 }
 0x28f   : > { %v962_v37 = vcombine.high %v3961_v7, %v3996_v22 }
 0x290   : > { %2742 = vrot.lane.b32.xlu1 %v3987_v16, %s3010_s22  ;;  %2722 = vrot.lane.b32.xlu0 %v3999_v11, %s3011_s23  ;;  %v2689_v16 = vcombine.low %v4017_v9, %v4005_v25 }
 0x292   : > { %v1114_v48 = vpop.permute.xlu1 %1113  ;;  %v1118_v18 = vpop.permute.xlu0 %1117  ;;  %v4056_v14 = vrot.slane %v2689_v16, %v3526_v62  ;;  %v4075_v16 = vrot.slane %v962_v37, %v3343_v52 }
 0x293   : > { %v1199_v10 = vcombine.low %v1110_v41, %v1118_v18 }
 0x294   : > { %2018 = vrot.lane.b32.xlu1 %v4022_v45, %s3010_s22  ;;  %1742 = vrot.lane.b32.xlu0 %v4025_v35, %s3010_s22  ;;  %v4045_v45 = vrot.slane %v1897_v47, %v3526_v62  ;;  %4949 = vst [vmem:[#allocation21_spill] sm:$0xff] %v4056_v14  ;;  %v4070_v47 = vrot.slane %v1934_v34, %v3343_v52 }
 0x295   : > { %v4061_v23 = vrot.slane %v1199_v10, %v3343_v52  ;;  %v4084_v10 = vrot.slane %v1918_v59, %v3343_v52  ;;  %v1200_v34 = vcombine.high %v1110_v41, %v1118_v18  ;;  %v994_v37 = vcombine.high %v4087_v54, %v4075_v16 }
 0x296   : > { %v1122_v42 = vpop.permute.xlu1 %1121  ;;  %v4039_v40 = vpop.permute.xlu0 %853  ;;  %4948 = vst [vmem:[#allocation20_spill] sm:$0xff] %v4045_v45 }
 0x297   : > { %v1215_v51 = vcombine.low %v1114_v48, %v1122_v42 }
 0x298   : > { %2496 = vrot.lane.b32.xlu1 %v4042_v31, %s3011_s23  ;;  %1998 = vrot.lane.b32.xlu0 %v4045_v45, %s3011_s23  ;;  %v1702_v31 = vcombine.high %v3880_v0, %v3883_v5  ;;  %v1216_v45 = vcombine.high %v1114_v48, %v1122_v42  ;;  %v4094_v42 = vrot.slane %v2622_v26, %v3526_v62 }
 0x299   : > { %v4064_v32 = vrot.slane %v1215_v51, %v3343_v52  ;;  %v1965_v48 = vcombine.low %v4084_v10, %v4070_v47  ;;  %v4111_v51 = vrot.slane %v1200_v34, %v3343_v52  ;;  %v2436_v26 = vcombine.high %v4002_v12, %v3982_v24 }
 0x29a   : > { %v4077_v30 = vpop.permute.xlu1 %857  ;;  %v4079_v57 = vpop.permute.xlu0 %861  ;;  %4950 = vst [vmem:[#allocation22_spill] sm:$0xff] %v4094_v42  ;;  %v4101_v59 = vrot.slane %v1216_v45, %v3343_v52  ;;  %v4108_v18 = vrot.slane %v1702_v31, %v3526_v62  ;;  %v2419_v45 = vcombine.low %v3899_v43, %v3874_v28  ;;  %v945_v28 = vcombine.low %v3922_v50, %v3963_v29 }
 0x29b   : > { %v4142_v43 = vrot.slane %v2436_v26, %v3526_v62  ;;  %v2690_v24 = vcombine.high %v4017_v9, %v4005_v25  ;;  %v1686_v25 = vcombine.high %v3828_v58, %v3852_v8  ;;  %v1949_v58 = vcombine.low %v3970_v15, %v3954_v56 }
 0x29c   : > { %2750 = vrot.lane.b32.xlu1 %v4056_v14, %s3011_s23  ;;  %2476 = vrot.lane.b32.xlu0 %v4067_v63, %s3012_s24  ;;  %4951 = vst [vmem:[#allocation23_spill] sm:$0xff] %v4108_v18  ;;  %v961_v14 = vcombine.low %v3961_v7, %v3996_v22  ;;  %v1248_v31 = vcombine.high %v4111_v51, %v4101_v59 }
 0x29d   : > { %4954 = vst [vmem:[#allocation26_spill] sm:$0xff] %v4142_v43  ;;  %v4145_v7 = vrot.slane %v2419_v45, %v3526_v62  ;;  %v2351_v22 = vcombine.low %v3813_v46, %v3801_v38  ;;  %v2605_v38 = vcombine.low %v3835_v49, %v3824_v39  ;;  %v4181_v26 = vrot.slane %v2690_v24, %v3526_v62 }
 0x29e   : > { %v4103_v17 = vpop.permute.xlu1 %865  ;;  %v4105_v41 = vpop.permute.xlu0 %1107  ;;  %v4152_v29 = vrot.slane %v961_v14, %v3343_v52  ;;  %v1670_v39 = vcombine.high %v3807_v60, %v3830_v6  ;;  %v4197_v8 = vrot.slane %v1686_v25, %v3343_v52 }
 0x29f   : > { %4955 = vst [vmem:[#allocation27_spill] sm:$0xff] %v4145_v7  ;;  %v2451_v46 = vcombine.high %v4145_v7, %v4934_v36  ;;  %4957 = vst [vmem:[#allocation29_spill] sm:$0xff] %v4181_v26  ;;  %v4194_v49 = vrot.slane %v2605_v38, %v3526_v62  ;;  %v4219_v38 = vrot.slane %v1949_v58, %v3526_v62 }
 0x2a0   : > { %1770 = vrot.lane.b32.xlu1 %v4108_v18, %s3010_s22  ;;  %2730 = vrot.lane.b32.xlu0 %v4094_v42, %s3012_s24  ;;  %v4130_v18 = vrot.slane %v1965_v48, %v3526_v62  ;;  %v4133_v42 = vrot.slane %v994_v37, %v3526_v62  ;;  %v4159_v48 = vrot.slane %v1248_v31, %v3526_v62 }
 0x2a1   : > { %v4162_v37 = vrot.slane %v945_v28, %v3343_v52  ;;  %v4184_v31 = vrot.slane %v2351_v22, %v3526_v62  ;;  %4959 = vst [vmem:[#allocation31_spill] sm:$0xff] %v4194_v49  ;;  %v1232_v28 = vcombine.high %v4061_v23, %v4064_v32  ;;  %v4211_v15 = vrot.slane %v1670_v39, %v3343_v52 }
 0x2a2   : > { %v4125_v34 = vpop.permute.xlu1 %1111  ;;  %v4127_v5 = vpop.permute.xlu0 %1115  ;;  %4952 = vst [vmem:[#allocation24_spill] sm:$0xff] %v4130_v18  ;;  %4953 = vst [vmem:[#allocation25_spill] sm:$0xff] %v4133_v42  ;;  %v2637_v56 = vcombine.high %v4194_v49, %v4934_v36  ;;  %v877_v58 = vcombine.low %v4039_v40, %v4079_v57 }
 0x2a3   : > { %4956 = vst [vmem:[#allocation28_spill] sm:$0xff] %v4159_v48  ;;  %v978_v9 = vcombine.high %v4162_v37, %v4152_v29  ;;  %4958 = vst [vmem:[#allocation30_spill] sm:$0xff] %v4184_v31  ;;  %v2383_v22 = vcombine.high %v4184_v31, %v4934_v36  ;;  %v1717_v25 = vcombine.low %v4211_v15, %v4197_v8 }
 0x2a4   : > { %2026 = vrot.lane.b32.xlu1 %v4130_v18, %s3011_s23  ;;  %1062 = vrot.lane.b32.xlu0 %v4133_v42, %s3012_s24  ;;  %4960 = vst [vmem:[#allocation32_spill] sm:$0xff] %v4219_v38 }
 0x2a5   : > { %v4206_v6 = vrot.slane %v978_v9, %v3526_v62  ;;  %v893_v9 = vcombine.low %v4077_v30, %v4103_v17 }
 0x2a6   : > { %v4154_v50 = vpop.permute.xlu1 %1119  ;;  %v4156_v12 = vpop.permute.xlu0 %2212 }
 0x2a7   : > { %v4244_v49 = vrot.slane %v893_v9, %v3343_v52 }
 0x2a8   : > { %2504 = vrot.lane.b32.xlu1 %v4142_v43, %s3012_s24  ;;  %1316 = vrot.lane.b32.xlu0 %v4159_v48, %s3012_s24 }
 0x2aa   : > { %v4176_v14 = vpop.permute.xlu1 %763  ;;  %v4178_v45 = vpop.permute.xlu0 %1488 }
 0x2ac   : > { %2758 = vrot.lane.b32.xlu1 %v4181_v26, %s3012_s24  ;;  %2484 = vrot.lane.b32.xlu0 %v2451_v46, %s3013_s25  ;;  %v1881_v46 = vcombine.low %v3868_v3, %v3850_v2  ;;  %v1966_v2 = vcombine.high %v4084_v10, %v4070_v47  ;;  %v1981_v3 = vcombine.high %v4219_v38, %v4934_v36 }
 0x2ad   : > { %v4259_v47 = vrot.slane %v877_v58, %v3343_v52  ;;  %v1131_v10 = vcombine.low %v4105_v41, %v4127_v5 }
 0x2ae   : > { %v4201_v24 = vpop.permute.xlu1 %2240  ;;  %v4203_v60 = vpop.permute.xlu0 %2220  ;;  %v4256_v42 = vrot.slane %v1881_v46, %v3526_v62  ;;  %v4267_v9 = vrot.slane %v1966_v2, %v3526_v62  ;;  %v1602_v2 = vcombine.high %v3854_v19, %v3891_v33 }
 0x2af   : > { %v910_v46 = vcombine.high %v4259_v47, %v4244_v49  ;;  %v4285_v26 = vrot.slane %v1131_v10, %v3343_v52 }
 0x2b0   : > { %1046 = vrot.lane.b32.xlu1 %v4206_v6, %s3010_s22  ;;  %2456 = vrot.lane.b32.xlu0 %v2383_v22, %s3013_s25  ;;  %v4232_v22 = vrot.slane %v1232_v28, %v3526_v62  ;;  %v1147_v28 = vcombine.low %v4125_v34, %v4154_v50  ;;  %4962 = vst [vmem:[#allocation34_spill] sm:$0xff] %v4256_v42 }
 0x2b2   : > { %v4227_v39 = vpop.permute.xlu1 %1516  ;;  %v4229_v31 = vpop.permute.xlu0 %799  ;;  %v4274_v58 = vrot.slane %v1147_v28, %v3343_v52  ;;  %v1633_v28 = vcombine.low %v3975_v21, %v3959_v53 }
 0x2b4   : > { %2710 = vrot.lane.b32.xlu0 %v2637_v56, %s3013_s25  ;;  %1300 = vrot.lane.b32.xlu1 %v4232_v22, %s3010_s22  ;;  %v4253_v56 = vrot.slane %v1717_v25, %v3526_v62  ;;  %v1618_v25 = vcombine.high %v3889_v4, %v3920_v44  ;;  %v2384_v4 = vcombine.high %v3859_v20, %v4934_v36 }
 0x2b5   : > { %v1164_v19 = vcombine.high %v4285_v26, %v4274_v58 }
 0x2b6   : > { %v4248_v48 = vpop.permute.xlu1 %2248  ;;  %v4250_v7 = vpop.permute.xlu0 %807  ;;  %v4293_v44 = vrot.slane %v1618_v25, %v3343_v52  ;;  %v2638_v25 = vcombine.high %v3896_v27, %v4934_v36 }
 0x2b7   : > { %4961 = vst [vmem:[#allocation33_spill] sm:$0xff] %v4250_v7 }
 0x2b8   : > { %2014 = vrot.lane.b32.xlu0 %v1981_v3, %s3013_s25  ;;  %1778 = vrot.lane.b32.xlu1 %v4253_v56, %s3011_s23  ;;  %v1913_v3 = vcombine.high %v4256_v42, %v4934_v36  ;;  %v4307_v42 = vrot.slane %v1602_v2, %v3343_v52  ;;  %v4324_v2 = vrot.slane %v1633_v28, %v3526_v62 }
 0x2b9   : > { %v993_v28 = vcombine.low %v4087_v54, %v4075_v16  ;;  %v1247_v16 = vcombine.low %v4111_v51, %v4101_v59  ;;  %v894_v54 = vcombine.high %v4077_v30, %v4103_v17  ;;  %v1718_v30 = vcombine.high %v4211_v15, %v4197_v8 }
 0x2ba   : > { %v4276_v7 = vpop.permute.xlu1 %1524  ;;  %v4278_v38 = vpop.permute.xlu0 %759  ;;  %v1649_v20 = vcombine.low %v4307_v42, %v4293_v44  ;;  %4963 = vst [vmem:[#allocation35_spill] sm:$0xff] %v4324_v2  ;;  %v1665_v27 = vcombine.high %v4324_v2, %v4934_v36  ;;  %v2639_v51 = vcombine.high %v3999_v11, %v4934_v36  ;;  %v909_v17 = vcombine.low %v4259_v47, %v4244_v49 }
 0x2bb   : > { %v1132_v8 = vcombine.high %v4105_v41, %v4127_v5  ;;  %v1163_v47 = vcombine.low %v4285_v26, %v4274_v58 }
 0x2bc   : > { %1986 = vrot.lane.b32.xlu0 %v1913_v3, %s3013_s25  ;;  %2034 = vrot.lane.b32.xlu1 %v4267_v9, %s3012_s24  ;;  %v4304_v3 = vrot.slane %v910_v46, %v3526_v62  ;;  %v4321_v46 = vrot.slane %v1164_v19, %v3526_v62  ;;  %v4338_v19 = vrot.slane %v1649_v20, %v3526_v62 }
 0x2bd   : > { %v977_v20 = vcombine.low %v4162_v37, %v4152_v29  ;;  %v4394_v37 = vrot.slane %v1247_v16, %v3526_v62  ;;  %v4413_v41 = vrot.slane %v909_v17, %v3526_v62 }
 0x2be   : > { %v4299_v33 = vpop.permute.xlu1 %2256  ;;  %v4301_v10 = vpop.permute.xlu0 %2208 }
 0x2bf   : > { %v4382_v59 = vrot.slane %v977_v20, %v3526_v62  ;;  %v941_v26 = vcombine.high %v4413_v41, %v4934_v36 }
 0x2c0   : > { %2464 = vrot.lane.b32.xlu0 %v2384_v4, %s3014_s26  ;;  %1018 = vrot.lane.b32.xlu1 %v4304_v3, %s3010_s22  ;;  %v1898_v4 = vcombine.high %v4008_v61, %v3992_v55  ;;  %v1914_v61 = vcombine.high %v3927_v13, %v4934_v36 }
 0x2c2   : > { %v4314_v53 = vpop.permute.xlu1 %1496  ;;  %v4316_v21 = vpop.permute.xlu0 %1512  ;;  %v4352_v2 = vrot.slane %v1898_v4, %v3526_v62  ;;  %v2385_v4 = vcombine.high %v3949_v1, %v4934_v36  ;;  %v908_v1 = vrot.slane %v894_v54, %v3343_v52 }
 0x2c4   : > { %2718 = vrot.lane.b32.xlu0 %v2638_v25, %s3014_s26  ;;  %1272 = vrot.lane.b32.xlu1 %v4321_v46, %s3010_s22  ;;  %4964 = vst [vmem:[#allocation36_spill] sm:$0xff] %v4352_v2 }
 0x2c6   : > { %v4331_v43 = vpop.permute.xlu1 %2228  ;;  %v4333_v18 = vpop.permute.xlu0 %1484 }
 0x2c8   : > { %1738 = vrot.lane.b32.xlu0 %v1665_v27, %s3013_s25  ;;  %1750 = vrot.lane.b32.xlu1 %v4338_v19, %s3011_s23 }
 0x2ca   : > { %v4345_v25 = vpop.permute.xlu1 %791  ;;  %v4347_v55 = vpop.permute.xlu0 %2216 }
 0x2cc   : > { %1994 = vrot.lane.b32.xlu0 %v1914_v61, %s3014_s26  ;;  %2006 = vrot.lane.b32.xlu1 %v4352_v2, %s3012_s24  ;;  %v4370_v61 = vrot.slane %v993_v28, %v3526_v62  ;;  %v878_v2 = vcombine.high %v4039_v40, %v4079_v57  ;;  %v1148_v40 = vcombine.high %v4125_v34, %v4154_v50 }
 0x2cd   : > { %v1009_v34 = vcombine.high %v4382_v59, %v4934_v36  ;;  %v4405_v50 = vrot.slane %v1718_v30, %v3526_v62  ;;  %v1146_v28 = vrot.slane %v1132_v8, %v3343_v52 }
 0x2ce   : > { %v4363_v27 = vpop.permute.xlu1 %1532  ;;  %v4365_v13 = vpop.permute.xlu0 %1492  ;;  %v892_v11 = vrot.slane %v878_v2, %v3343_v52  ;;  %v1162_v15 = vrot.slane %v1148_v40, %v3343_v52  ;;  %v1650_v52 = vcombine.high %v4307_v42, %v4293_v44  ;;  %v1666_v44 = vcombine.high %v4025_v35, %v4934_v36  ;;  %v4969_v35 = vld [vmem:[#allocation20_spill] sm:$0xff] }
 0x2d0   : > { %2472 = vrot.lane.b32.xlu0 %v2385_v4, %s3015_s27  ;;  %1054 = vrot.lane.b32.xlu1 %v4370_v61, %s3011_s23  ;;  %v925_v49 = vcombine.low %v892_v11, %v908_v1  ;;  %v1179_v20 = vcombine.low %v1146_v28, %v1162_v15  ;;  %v4427_v4 = vrot.slane %v1163_v47, %v3526_v62  ;;  %v4966_v47 = vld [vmem:[#allocation8_spill] sm:$0xff] }
 0x2d1   : > { %v926_v8 = vcombine.high %v892_v11, %v908_v1  ;;  %v4445_v42 = vrot.slane %v1650_v52, %v3526_v62  ;;  %v1180_v11 = vcombine.high %v1146_v28, %v1162_v15  ;;  %v4970_v28 = vld [vmem:[#allocation12_spill] sm:$0xff] }
 0x2d2   : > { %v4389_v57 = vpop.permute.xlu1 %1504  ;;  %v4391_v29 = vpop.permute.xlu0 %2224  ;;  %v4424_v58 = vrot.slane %v925_v49, %v3526_v62  ;;  %v4435_v17 = vrot.slane %v1179_v20, %v3526_v62  ;;  %v1195_v40 = vcombine.high %v4427_v4, %v4934_v36  ;;  %v2263_v20 = vsel %vm814_vm3, %v4966_v47, %v4301_v10 }
 0x2d3   : > { %v1915_v10 = vcombine.high %v4969_v35, %v4934_v36  ;;  %v2264_v52 = vsel %vm816_vm4, %v2263_v20, %v4156_v12 }
 0x2d4   : > { %2726 = vrot.lane.b32.xlu0 %v2639_v51, %s3015_s27  ;;  %1308 = vrot.lane.b32.xlu1 %v4394_v37, %s3011_s23  ;;  %v2265_v15 = vsel %vm818_vm5, %v2264_v52, %v4347_v55  ;;  %v4972_v55 = vld [vmem:[#allocation11_spill] sm:$0xff] }
 0x2d6   : > { %v4410_v2 = vpop.permute.xlu1 %771  ;;  %v788_v5 = vpop.permute.xlu0 %787 }
 0x2d8   : > { %1042 = vrot.lane.b32.xlu0 %v1009_v34, %s3013_s25  ;;  %1786 = vrot.lane.b32.xlu1 %v4405_v50, %s3012_s24 }
 0x2da   : > { %v4419_v16 = vpop.permute.xlu1 %779  ;;  %v1529_v54 = vpop.permute.xlu0 %1528 }
 0x2db   : > { %4965 = vst [vmem:[#allocation37_spill] sm:$0xff] %v4419_v16 }
 0x2dc   : > { %1014 = vrot.lane.b32.xlu0 %v941_v26, %s3013_s25  ;;  %1026 = vrot.lane.b32.xlu1 %v4424_v58, %s3011_s23  ;;  %v4967_v26 = vld [vmem:[#allocation9_spill] sm:$0xff] }
 0x2dd   : > { %v1546_v16 = vsel %vm814_vm3, %v4967_v26, %v4316_v21 }
 0x2de   : > { %v2237_v30 = vpop.permute.xlu1 %2236  ;;  %v2261_v51 = vpop.permute.xlu0 %2260  ;;  %v1547_v47 = vsel %vm816_vm4, %v1546_v16, %v4227_v39  ;;  %v4971_v39 = vld [vmem:[#allocation10_spill] sm:$0xff] }
 0x2df   : > { %v4973_v16 = vcombine.low %v4971_v39, %v4972_v55  ;;  %v4976_v55 = vld [vmem:[#allocation7_spill] sm:$0xff] }
 0x2e0   : > { %1280 = vrot.lane.b32.xlu1 %v4435_v17, %s3011_s23  ;;  %1268 = vrot.lane.b32.xlu0 %v1195_v40, %s3013_s25  ;;  %v4968_v40 = vld [vmem:[#allocation14_spill] sm:$0xff] }
 0x2e1   : > { %v2270_v1 = vsel %vm814_vm3, %v4968_v40, %v2237_v30  ;;  %v4469_v40 = vrot.slane %v926_v8, %v3526_v62  ;;  %v4486_v8 = vrot.slane %v4973_v16, %v3526_v62  ;;  %v815_v16 = vsel %vm814_vm3, %v4976_v55, %v4278_v38 }
 0x2e2   : > { %v2245_v34 = vpop.permute.xlu1 %2244  ;;  %v4442_v49 = vpop.permute.xlu0 %1500  ;;  %v2271_v21 = vsel %vm816_vm4, %v2270_v1, %v4201_v24  ;;  %v2386_v1 = vcombine.high %v4067_v63, %v4934_v36  ;;  %v1735_v38 = vcombine.high %v4253_v56, %v4934_v36 }
 0x2e3   : > { %v2272_v35 = vsel %vm818_vm5, %v2271_v21, %v2245_v34 }
 0x2e4   : > { %1758 = vrot.lane.b32.xlu1 %v4445_v42, %s3012_s24  ;;  %1746 = vrot.lane.b32.xlu0 %v1666_v44, %s3014_s26  ;;  %v828_v44 = vsel %vm814_vm3, %v4970_v28, %v788_v5  ;;  %v4974_v5 = vld [vmem:[#allocation5_spill] sm:$0xff]  ;;  %v2273_v21 = vsel %vm820_vm6, %v2272_v35, %v4248_v48  ;;  %v1010_v35 = vcombine.high %v4206_v6, %v4934_v36  ;;  %v4975_v6 = vld [vmem:[#allocation16_spill] sm:$0xff] }
 0x2e5   : > { %v1539_v34 = vsel %vm814_vm3, %v4974_v5, %v4333_v18  ;;  %v829_v52 = vsel %vm816_vm4, %v828_v44, %v4345_v25  ;;  %v2452_v39 = vcombine.high %v4975_v6, %v4934_v36  ;;  %v4984_v6 = vld [vmem:[#allocation36_spill] sm:$0xff] }
 0x2e6   : > { %v1521_v30 = vpop.permute.xlu1 %1520  ;;  %v796_v26 = vpop.permute.xlu0 %795 }
 0x2e7   : > { %v1548_v12 = vsel %vm818_vm5, %v1547_v47, %v1521_v30  ;;  %v830_v47 = vsel %vm818_vm5, %v829_v52, %v796_v26 }
 0x2e8   : > { %v1549_v24 = vsel %vm820_vm6, %v1548_v12, %v4276_v7  ;;  %1034 = vrot.lane.b32.xlu1 %v4469_v40, %s3012_s24  ;;  %2002 = vrot.lane.b32.xlu0 %v1915_v10, %s3015_s27  ;;  %v4493_v7 = vrot.slane %v1180_v11, %v3526_v62  ;;  %v2266_v10 = vsel %vm820_vm6, %v2265_v15, %v4203_v60 }
 0x2e9   : > { %v1550_v20 = vsel %vm822_vm7, %v1549_v24, %v1529_v54  ;;  %v2267_v11 = vsel %vm822_vm7, %v2266_v10, %v4391_v29  ;;  %v1540_v29 = vsel %vm816_vm4, %v1539_v34, %v4178_v45  ;;  %v831_v28 = vsel %vm820_vm6, %v830_v47, %v4229_v31 }
 0x2ea   : > { %v2253_v30 = vpop.permute.xlu1 %2252  ;;  %v1551_v18 = vsel %vm824_vm8, %v1550_v20, %v4363_v27  ;;  %v1537_v54 = vpop.permute.xlu0 %1536  ;;  %v2705_v27 = vcombine.high %v4486_v8, %v4934_v36  ;;  %v817_v20 = vsel %vm816_vm4, %v815_v16, %v4176_v14 }
 0x2eb   : > { %v2274_v63 = vsel %vm822_vm7, %v2273_v21, %v2253_v30  ;;  %v1552_v60 = vsel %vm826_vm9, %v1551_v18, %v1537_v54 }
 0x2ec   : > { %v2275_v25 = vsel %vm824_vm8, %v2274_v63, %v4299_v33  ;;  %v1556_v15 = vrot.slane %v1552_v60, 4  ;;  %1288 = vrot.lane.b32.xlu1 %v4493_v7, %s3012_s24  ;;  %2480 = vrot.lane.b32.xlu0 %v2386_v1, %s3016_s28  ;;  %v2268_v33 = vsel %vm824_vm8, %v2267_v11, %v4331_v43  ;;  %v1984_v11 = vcombine.high %v4267_v9, %v4934_v36 }
 0x2ed   : > { %v2276_v48 = vsel %vm826_vm9, %v2275_v25, %v2261_v51  ;;  %v1541_v51 = vsel %vm818_vm5, %v1540_v29, %v4365_v13  ;;  %v1264_v13 = vcombine.high %v4232_v22, %v4934_v36 }
 0x2ee   : > { %2278 = vst [vmem:[#allocation4 + $0x20] sm:$0xf] %v2276_v48  ;;  %1560 = vst [vmem:[#allocation4 + $0x10] sm:$0xf0] %v1556_v15  ;;  %v2233_v26 = vpop.permute.xlu1 %2232  ;;  %v804_v44 = vpop.permute.xlu0 %803  ;;  %v1542_v43 = vsel %vm820_vm6, %v1541_v51, %v4314_v53  ;;  %v4977_v53 = vld [vmem:[#allocation17_spill] sm:$0xff]  ;;  %v942_v15 = vcombine.high %v4304_v3, %v4934_v36  ;;  %v4983_v51 = vcombine.low %v4061_v23, %v4064_v32  ;;  %v4985_v32 = vld [vmem:[#allocation23_spill] sm:$0xff] }
 0x2ef   : > { %v2269_v12 = vsel %vm826_vm9, %v2268_v33, %v2233_v26  ;;  %v4530_v45 = vsel %vm822_vm7, %v831_v28, %v804_v44  ;;  %v1543_v5 = vsel %vm822_vm7, %v1542_v43, %v4442_v49  ;;  %v2706_v34 = vcombine.high %v4977_v53, %v4934_v36  ;;  %v4978_v49 = vld [vmem:[#allocation15_spill] sm:$0xff]  ;;  %v4982_v28 = vld [vmem:[#allocation21_spill] sm:$0xff] }
 0x2f0   : > { %2277 = vst [vmem:[#allocation4 + $0x8] sm:$0xf] %v2269_v12  ;;  %2738 = vrot.lane.b32.xlu1 %v2705_v27, %s3013_s25  ;;  %1050 = vrot.lane.b32.xlu0 %v1010_v35, %s3014_s26  ;;  %v1544_v22 = vsel %vm824_vm8, %v1543_v5, %v4389_v57  ;;  %v4979_v52 = vcombine.low %v3880_v0, %v4978_v49  ;;  %v4981_v27 = vld [vmem:[#allocation19_spill] sm:$0xff]  ;;  %v4986_v5 = vld [vmem:[#allocation24_spill] sm:$0xff] }
 0x2f1   : > { %v2453_v29 = vcombine.high %v4981_v27, %v4934_v36  ;;  %v1196_v26 = vcombine.high %v4321_v46, %v4934_v36  ;;  %v2707_v44 = vcombine.high %v4982_v28, %v4934_v36  ;;  %v1667_v35 = vcombine.high %v4338_v19, %v4934_v36 }
 0x2f2   : > { %v768_v31 = vpop.permute.xlu1 %767  ;;  %v4536_v24 = vpop.permute.xlu0 %2460  ;;  %v4563_v21 = vrot.slane %v4979_v52, %v3526_v62  ;;  %v4612_v12 = vrot.slane %v4983_v51, %v3526_v62  ;;  %v1916_v19 = vcombine.high %v4984_v6, %v4934_v36  ;;  %v1983_v53 = vcombine.high %v4986_v5, %v4934_v36  ;;  %v4988_v52 = vld [vmem:[#allocation29_spill] sm:$0xff] }
 0x2f3   : > { %v819_v30 = vsel %vm818_vm5, %v817_v20, %v768_v31  ;;  %v1197_v51 = vcombine.high %v4435_v17, %v4934_v36  ;;  %v4994_v17 = vld [vmem:[#allocation6_spill] sm:$0xff] }
 0x2f4   : > { %2492 = vrot.lane.b32.xlu1 %v2452_v39, %s3014_s26  ;;  %1304 = vrot.lane.b32.xlu0 %v1264_v13, %s3014_s26  ;;  %v821_v56 = vsel %vm820_vm6, %v819_v30, %v4410_v2  ;;  %v1733_v0 = vcombine.high %v4563_v21, %v4934_v36  ;;  %v4980_v2 = vld [vmem:[#allocation18_spill] sm:$0xff]  ;;  %v1263_v31 = vcombine.high %v4612_v12, %v4934_v36 }
 0x2f5   : > { %v1982_v25 = vcombine.high %v4980_v2, %v4934_v36  ;;  %v1734_v39 = vcombine.high %v4985_v32, %v4934_v36  ;;  %v1011_v13 = vcombine.high %v4370_v61, %v4934_v36  ;;  %v2708_v30 = vcombine.high %v4988_v52, %v4934_v36  ;;  %v4991_v2 = vld [vmem:[#allocation27_spill] sm:$0xff]  ;;  %v4997_v52 = vld [vmem:[#allocation30_spill] sm:$0xff] }
 0x2f6   : > { %v1509_v1 = vpop.permute.xlu1 %1508  ;;  %v4555_v10 = vpop.permute.xlu0 %2714 }
 0x2f7   : > { %v1545_v18 = vsel %vm826_vm9, %v1544_v22, %v1509_v1  ;;  %v4987_v1 = vld [vmem:[#allocation26_spill] sm:$0xff] }
 0x2f8   : > { %v1555_v14 = vrot.slane %v1545_v18, 4  ;;  %2746 = vrot.lane.b32.xlu1 %v2706_v34, %s3014_s26  ;;  %1782 = vrot.lane.b32.xlu0 %v1735_v38, %s3015_s27  ;;  %v1265_v34 = vcombine.high %v4394_v37, %v4934_v36  ;;  %v2454_v22 = vcombine.high %v4987_v1, %v4934_v36  ;;  %v1736_v38 = vcombine.high %v4405_v50, %v4934_v36  ;;  %v4996_v1 = vld [vmem:[#allocation13_spill] sm:$0xff] }
 0x2f9   : > { %v1668_v18 = vcombine.high %v4445_v42, %v4934_v36 }
 0x2fa   : > { %1559 = vst [vmem:[#allocation4 + $0x18] sm:$0xf0] %v1555_v14  ;;  %v776_v57 = vpop.permute.xlu1 %775  ;;  %v4571_v54 = vpop.permute.xlu0 %1990 }
 0x2fb   : > { %v4578_v47 = vsel %vm822_vm7, %v821_v56, %v776_v57  ;;  %v4989_v57 = vld [vmem:[#allocation22_spill] sm:$0xff] }
 0x2fc   : > { %1766 = vrot.lane.b32.xlu1 %v1733_v0, %s3013_s25  ;;  %2038 = vrot.lane.b32.xlu0 %v1984_v11, %s3016_s28  ;;  %v2640_v56 = vcombine.high %v4989_v57, %v4934_v36  ;;  %v4990_v0 = vld [vmem:[#allocation25_spill] sm:$0xff] }
 0x2fd   : > { %v1012_v11 = vcombine.high %v4990_v0, %v4934_v36 }
 0x2fe   : > { %v2489_v63 = vpop.permute.xlu1 %2488  ;;  %v4582_v60 = vpop.permute.xlu0 %2468 }
 0x300   : > { %2022 = vrot.lane.b32.xlu1 %v1982_v25, %s3014_s26  ;;  %1022 = vrot.lane.b32.xlu0 %v942_v15, %s3014_s26 }
 0x302   : > { %v4590_v9 = vpop.permute.xlu1 %2742  ;;  %v4592_v48 = vpop.permute.xlu0 %2722 }
 0x304   : > { %2500 = vrot.lane.b32.xlu1 %v2453_v29, %s3015_s27  ;;  %1276 = vrot.lane.b32.xlu0 %v1196_v26, %s3014_s26  ;;  %v943_v29 = vcombine.high %v4424_v58, %v4934_v36  ;;  %v4992_v26 = vld [vmem:[#allocation28_spill] sm:$0xff] }
 0x305   : > { %v1266_v28 = vcombine.high %v4992_v26, %v4934_v36 }
 0x306   : > { %v4600_v33 = vpop.permute.xlu1 %2018  ;;  %v4602_v3 = vpop.permute.xlu0 %1742 }
 0x308   : > { %2754 = vrot.lane.b32.xlu1 %v2707_v44, %s3015_s27  ;;  %1754 = vrot.lane.b32.xlu0 %v1667_v35, %s3015_s27 }
 0x30a   : > { %v4616_v46 = vpop.permute.xlu1 %2496  ;;  %v4618_v43 = vpop.permute.xlu0 %1998 }
 0x30c   : > { %1296 = vrot.lane.b32.xlu1 %v1263_v31, %s3013_s25  ;;  %2010 = vrot.lane.b32.xlu0 %v1916_v19, %s3016_s28  ;;  %v4993_v31 = vld [vmem:[#allocation31_spill] sm:$0xff] }
 0x30e   : > { %v4626_v62 = vpop.permute.xlu1 %2750  ;;  %v4628_v23 = vpop.permute.xlu0 %2476 }
 0x310   : > { %1774 = vrot.lane.b32.xlu1 %v1734_v39, %s3014_s26  ;;  %1058 = vrot.lane.b32.xlu0 %v1011_v13, %s3015_s27  ;;  %v944_v39 = vcombine.high %v4469_v40, %v4934_v36  ;;  %v757_v13 = vcombine.high %v4994_v17, %v4934_v36 }
 0x312   : > { %v4636_v55 = vpop.permute.xlu1 %1770  ;;  %v4638_v16 = vpop.permute.xlu0 %2730 }
 0x314   : > { %2030 = vrot.lane.b32.xlu1 %v1983_v53, %s3015_s27  ;;  %1312 = vrot.lane.b32.xlu0 %v1265_v34, %s3015_s27 }
 0x316   : > { %v4646_v20 = vpop.permute.xlu1 %2026  ;;  %v4648_v61 = vpop.permute.xlu0 %1062 }
 0x318   : > { %2508 = vrot.lane.b32.xlu1 %v2454_v22, %s3016_s28  ;;  %1790 = vrot.lane.b32.xlu0 %v1736_v38, %s3016_s28  ;;  %v689_v22 = vcombine.high %v4996_v1, %v4934_v36  ;;  %v3017_v38 = vmov 0  }
 0x319   : > { %2975 = vset.pattern.permute.xlu0 %v3017_v38 }
 0x31a   : > { %v4656_v49 = vpop.permute.xlu1 %2504  ;;  %v4658_v37 = vpop.permute.xlu0 %1316 }
 0x31c   : > { %2762 = vrot.lane.b32.xlu1 %v2708_v30, %s3016_s28  ;;  %1762 = vrot.lane.b32.xlu0 %v1668_v18, %s3016_s28  ;;  %v4998_v18 = vld [vmem:[#allocation34_spill] sm:$0xff] }
 0x31e   : > { %v4666_v14 = vpop.permute.xlu1 %2758  ;;  %v2485_v50 = vpop.permute.xlu0 %2484 }
 0x31f   : > { %v2518_v25 = vsel %vm814_vm3, %v4991_v2, %v2485_v50 }
 0x320   : > { %2734 = vrot.lane.b32.xlu1 %v2640_v56, %s3016_s28  ;;  %1066 = vrot.lane.b32.xlu0 %v1012_v11, %s3016_s28  ;;  %v4677_v42 = vsel %vm816_vm4, %v2518_v25, %v2489_v63  ;;  %v1198_v63 = vcombine.high %v4493_v7, %v4934_v36  ;;  %v4995_v7 = vld [vmem:[#allocation32_spill] sm:$0xff] }
 0x322   : > { %v1047_v15 = vpop.permute.xlu1 %1046  ;;  %v2457_v27 = vpop.permute.xlu0 %2456 }
 0x323   : > { %v2511_v30 = vsel %vm814_vm3, %v4997_v52, %v2457_v27 }
 0x324   : > { %1030 = vrot.lane.b32.xlu1 %v943_v29, %s3015_s27  ;;  %1320 = vrot.lane.b32.xlu0 %v1266_v28, %s3016_s28  ;;  %v2512_v56 = vsel %vm816_vm4, %v2511_v30, %v4536_v24  ;;  %v4999_v28 = vld [vmem:[#allocation35_spill] sm:$0xff] }
 0x326   : > { %v4685_v44 = vpop.permute.xlu1 %1300  ;;  %v2711_v35 = vpop.permute.xlu0 %2710 }
 0x327   : > { %v2765_v6 = vsel %vm814_vm3, %v4993_v31, %v2711_v35 }
 0x328   : > { %1284 = vrot.lane.b32.xlu1 %v1197_v51, %s3015_s27  ;;  %1292 = vrot.lane.b32.xlu0 %v1198_v63, %s3016_s28  ;;  %v2766_v58 = vsel %vm816_vm4, %v2765_v6, %v4555_v10  ;;  %v2792_v10 = vld [vmem:[%s4883_s2] sm:$0xff] }
 0x32a   : > { %v4697_v19 = vpop.permute.xlu1 %1778  ;;  %v2015_v32 = vpop.permute.xlu0 %2014 }
 0x32b   : > { %v2048_v5 = vsel %vm814_vm3, %v4995_v7, %v2015_v32 }
 0x32c   : > { %1038 = vrot.lane.b32.xlu1 %v944_v39, %s3016_s28  ;;  %811 = vrot.lane.b32.xlu0 %v757_v13, %s3016_s28  ;;  %v4709_v53 = vsel %vm816_vm4, %v2048_v5, %v4600_v33 }
 0x32e   : > { %v4714_v34 = vpop.permute.xlu1 %2034  ;;  %v1987_v40 = vpop.permute.xlu0 %1986 }
 0x32f   : > { %v2041_v50 = vsel %vm814_vm3, %v4998_v18, %v1987_v40 }
 0x330   : > { %783 = vrot.lane.b32.xlu1 %v689_v22, %s3016_s28  ;;  %v2042_v33 = vsel %vm816_vm4, %v2041_v50, %v4571_v54  ;;  %2795 = vperm.xlu0 %2975, %v2792_v10  }
 0x332   : > { %v1019_v57 = vpop.permute.xlu1 %1018  ;;  %v2465_v0 = vpop.permute.xlu0 %2464 }
 0x333   : > { %v2513_v36 = vsel %vm818_vm5, %v2512_v56, %v2465_v0 }
 0x334   : > { %v2514_v11 = vsel %vm820_vm6, %v2513_v36, %v4582_v60 }
 0x336   : > { %v1273_v2 = vpop.permute.xlu1 %1272  ;;  %v2719_v25 = vpop.permute.xlu0 %2718 }
 0x337   : > { %v2767_v27 = vsel %vm818_vm5, %v2766_v58, %v2719_v25 }
 0x338   : > { %v2768_v29 = vsel %vm820_vm6, %v2767_v27, %v4592_v48 }
 0x33a   : > { %v1751_v26 = vpop.permute.xlu1 %1750  ;;  %v1739_v54 = vpop.permute.xlu0 %1738 }
 0x33b   : > { %v1793_v35 = vsel %vm814_vm3, %v4999_v28, %v1739_v54 }
 0x33c   : > { %v1794_v24 = vsel %vm816_vm4, %v1793_v35, %v4602_v3 }
 0x33e   : > { %v2007_v51 = vpop.permute.xlu1 %2006  ;;  %v1995_v63 = vpop.permute.xlu0 %1994 }
 0x33f   : > { %v2043_v31 = vsel %vm818_vm5, %v2042_v33, %v1995_v63 }
 0x340   : > { %v2044_v60 = vsel %vm820_vm6, %v2043_v31, %v4618_v43 }
 0x342   : > { %v1055_v6 = vpop.permute.xlu1 %1054  ;;  %v2473_v58 = vpop.permute.xlu0 %2472 }
 0x343   : > { %v2515_v32 = vsel %vm822_vm7, %v2514_v11, %v2473_v58 }
 0x344   : > { %v2516_v48 = vsel %vm824_vm8, %v2515_v32, %v4628_v23 }
 0x346   : > { %v4743_v39 = vpop.permute.xlu1 %1308  ;;  %v2727_v17 = vpop.permute.xlu0 %2726 }
 0x347   : > { %v2769_v13 = vsel %vm822_vm7, %v2768_v29, %v2727_v17 }
 0x348   : > { %v4748_v3 = vsel %vm824_vm8, %v2769_v13, %v4638_v16 }
 0x34a   : > { %v4750_v7 = vpop.permute.xlu1 %1786  ;;  %v1043_v5 = vpop.permute.xlu0 %1042 }
 0x34b   : > { %v1076_v43 = vsel %vm814_vm3, %v4382_v59, %v1043_v5 }
 0x34c   : > { %v1077_v10 = vsel %vm816_vm4, %v1076_v43, %v1047_v15 }
 0x34e   : > { %v1027_v40 = vpop.permute.xlu1 %1026  ;;  %v1015_v1 = vpop.permute.xlu0 %1014 }
 0x34f   : > { %v1069_v23 = vsel %vm814_vm3, %v4413_v41, %v1015_v1 }
 0x350   : > { %v1070_v22 = vsel %vm816_vm4, %v1069_v23, %v1019_v57 }
 0x352   : > { %v1281_v38 = vpop.permute.xlu1 %1280  ;;  %v1269_v52 = vpop.permute.xlu0 %1268 }
 0x353   : > { %v1323_v16 = vsel %vm814_vm3, %v4427_v4, %v1269_v52 }
 0x354   : > { %v1324_v30 = vsel %vm816_vm4, %v1323_v16, %v1273_v2 }
 0x356   : > { %v4761_v18 = vpop.permute.xlu1 %1758  ;;  %v1747_v50 = vpop.permute.xlu0 %1746 }
 0x357   : > { %v1795_v59 = vsel %vm818_vm5, %v1794_v24, %v1747_v50 }
 0x358   : > { %v4765_v15 = vsel %vm820_vm6, %v1795_v59, %v1751_v26 }
 0x35a   : > { %v4767_v33 = vpop.permute.xlu1 %1034  ;;  %v2003_v41 = vpop.permute.xlu0 %2002 }
 0x35b   : > { %v2045_v43 = vsel %vm822_vm7, %v2044_v60, %v2003_v41 }
 0x35c   : > { %v2046_v1 = vsel %vm824_vm8, %v2045_v43, %v2007_v51 }
 0x35e   : > { %v4769_v56 = vpop.permute.xlu1 %1288  ;;  %v2481_v57 = vpop.permute.xlu0 %2480 }
 0x35f   : > { %v2517_v0 = vsel %vm826_vm9, %v2516_v48, %v2481_v57 }
 0x360   : > { %v2527_v36 = vrot.slane %v2517_v0, 4 }
 0x362   : > { %2531 = vst [vmem:[#allocation4 + $0x8] sm:$0xf0] %v2527_v36  ;;  %v2739_v4 = vpop.permute.xlu1 %2738  ;;  %v1051_v11 = vpop.permute.xlu0 %1050 }
 0x363   : > { %v1078_v2 = vsel %vm818_vm5, %v1077_v10, %v1051_v11  ;;  %v2772_v50 = vsel %vm814_vm3, %v4486_v8, %v2739_v4 }
 0x364   : > { %v4774_v25 = vsel %vm820_vm6, %v1078_v2, %v1055_v6  ;;  %v2773_v41 = vsel %vm816_vm4, %v2772_v50, %v4590_v9 }
 0x366   : > { %v2493_v27 = vpop.permute.xlu1 %2492  ;;  %v4776_v29 = vpop.permute.xlu0 %1304 }
 0x367   : > { %v2520_v60 = vsel %vm818_vm5, %v4677_v42, %v2493_v27 }
 0x369   : > { %v2788_v50 = vld [vmem:[#allocation4 + $0x8] sm:$0xff] }
 0x36a   : > { %v2747_v26 = vpop.permute.xlu1 %2746  ;;  %v1783_v54 = vpop.permute.xlu0 %1782 }
 0x36b   : > { %v2774_v42 = vsel %vm818_vm5, %v2773_v41, %v2747_v26 }
 0x36e   : > { %v1767_v28 = vpop.permute.xlu1 %1766  ;;  %v2039_v35 = vpop.permute.xlu0 %2038 }
 0x372   : > { %v2023_v24 = vpop.permute.xlu1 %2022  ;;  %v1023_v63 = vpop.permute.xlu0 %1022 }
 0x373   : > { %v1071_v31 = vsel %vm818_vm5, %v1070_v22, %v1023_v63  ;;  %v1800_v22 = vsel %vm814_vm3, %v4563_v21, %v1767_v28  ;;  %v2050_v51 = vsel %vm818_vm5, %v4709_v53, %v2023_v24 }
 0x374   : > { %v4780_v58 = vsel %vm820_vm6, %v1071_v31, %v1027_v40  ;;  %v1801_v16 = vsel %vm816_vm4, %v1800_v22, %v4636_v55  ;;  %v2521_v55 = vsel %vm820_vm6, %v2520_v60, %v4616_v46  ;;  %v2051_v8 = vsel %vm820_vm6, %v2050_v51, %v4646_v20 }
 0x375   : > { %v2775_v20 = vsel %vm820_vm6, %v2774_v42, %v4626_v62 }
 0x376   : > { %v2501_v32 = vpop.permute.xlu1 %2500  ;;  %v1277_v48 = vpop.permute.xlu0 %1276 }
 0x377   : > { %v1325_v17 = vsel %vm818_vm5, %v1324_v30, %v1277_v48  ;;  %v2522_v53 = vsel %vm822_vm7, %v2521_v55, %v2501_v32 }
 0x378   : > { %v4784_v6 = vsel %vm820_vm6, %v1325_v17, %v1281_v38  ;;  %v2523_v27 = vsel %vm824_vm8, %v2522_v53, %v4656_v49 }
 0x37a   : > { %v2755_v13 = vpop.permute.xlu1 %2754  ;;  %v1755_v5 = vpop.permute.xlu0 %1754 }
 0x37b   : > { %v2776_v28 = vsel %vm822_vm7, %v2775_v20, %v2755_v13 }
 0x37c   : > { %v2777_v49 = vsel %vm824_vm8, %v2776_v28, %v4666_v14 }
 0x37e   : > { %v1297_v10 = vpop.permute.xlu1 %1296  ;;  %v2011_v23 = vpop.permute.xlu0 %2010 }
 0x37f   : > { %v2047_v40 = vsel %vm826_vm9, %v2046_v1, %v2011_v23  ;;  %v1330_v9 = vsel %vm814_vm3, %v4612_v12, %v1297_v10 }
 0x380   : > { %v2057_v52 = vrot.slane %v2047_v40, 4  ;;  %v1331_v62 = vsel %vm816_vm4, %v1330_v9, %v4685_v44 }
 0x381   : > { %v1332_v32 = vsel %vm818_vm5, %v1331_v62, %v4776_v29 }
 0x382   : > { %2061 = vst [vmem:[#allocation4 + $0x48] sm:$0xf0] %v2057_v52  ;;  %v1775_v38 = vpop.permute.xlu1 %1774  ;;  %v1059_v30 = vpop.permute.xlu0 %1058  ;;  %v1333_v14 = vsel %vm820_vm6, %v1332_v32, %v4743_v39 }
 0x383   : > { %v1802_v21 = vsel %vm818_vm5, %v1801_v16, %v1775_v38 }
 0x384   : > { %v1803_v59 = vsel %vm820_vm6, %v1802_v21, %v4697_v19 }
 0x385   : > { %v1804_v4 = vsel %vm822_vm7, %v1803_v59, %v1783_v54 }
 0x386   : > { %v2031_v57 = vpop.permute.xlu1 %2030  ;;  %v1313_v0 = vpop.permute.xlu0 %1312  ;;  %v1805_v26 = vsel %vm824_vm8, %v1804_v4, %v4750_v7  ;;  %v2781_v4 = vld [vmem:[%s4882_s1] sm:$0xff] }
 0x387   : > { %v2052_v36 = vsel %vm822_vm7, %v2051_v8, %v2031_v57 }
 0x388   : > { %v2053_v19 = vsel %vm824_vm8, %v2052_v36, %v4714_v34  ;;  %v1797_v34 = vsel %vm822_vm7, %v4765_v15, %v1755_v5  ;;  %v1080_v15 = vsel %vm822_vm7, %v4774_v25, %v1059_v30  ;;  %v1334_v5 = vsel %vm822_vm7, %v1333_v14, %v1313_v0  ;;  %v5001_v0 = vld [vmem:[#allocation37_spill] sm:$0xff] }
 0x389   : > { %v2054_v46 = vsel %vm826_vm9, %v2053_v19, %v2039_v35  ;;  %v1798_v63 = vsel %vm824_vm8, %v1797_v34, %v4761_v18  ;;  %v1081_v18 = vsel %vm824_vm8, %v1080_v15, %v4648_v61  ;;  %v1335_v39 = vsel %vm824_vm8, %v1334_v5, %v4658_v37 }
 0x38a   : > { %v2058_v11 = vrot.slane %v2054_v46, 4  ;;  %v2509_v2 = vpop.permute.xlu1 %2508  ;;  %v1791_v54 = vpop.permute.xlu0 %1790 }
 0x38b   : > { %v2524_v12 = vsel %vm826_vm9, %v2523_v27, %v2509_v2  ;;  %v1806_v35 = vsel %vm826_vm9, %v1805_v26, %v1791_v54 }
 0x38c   : > { %2062 = vst [vmem:[#allocation4 + $0x28] sm:$0xf0] %v2058_v11  ;;  %v2528_v24 = vrot.slane %v2524_v12, 4  ;;  %1808 = vst [vmem:[#allocation4 + $0x28] sm:$0xf] %v1806_v35 }
 0x38e   : > { %2532 = vst [vmem:[#allocation4 + $0x20] sm:$0xf0] %v2528_v24  ;;  %v2763_v7 = vpop.permute.xlu1 %2762  ;;  %v1763_v31 = vpop.permute.xlu0 %1762 }
 0x38f   : > { %v2778_v44 = vsel %vm826_vm9, %v2777_v49, %v2763_v7  ;;  %v1799_v48 = vsel %vm826_vm9, %v1798_v63, %v1763_v31 }
 0x390   : > { %2780 = vst [vmem:[#allocation4 + $0x38] sm:$0xf] %v2778_v44  ;;  %1807 = vst [vmem:[#allocation4 + $0x48] sm:$0xf] %v1799_v48 }
 0x392   : > { %v2735_v17 = vpop.permute.xlu1 %2734  ;;  %v1067_v13 = vpop.permute.xlu0 %1066 }
 0x393   : > { %v2771_v25 = vsel %vm826_vm9, %v4748_v3, %v2735_v17  ;;  %v1082_v29 = vsel %vm826_vm9, %v1081_v18, %v1067_v13 }
 0x394   : > { %2779 = vst [vmem:[#allocation4 + $0x40] sm:$0xf] %v2771_v25  ;;  %v1086_v43 = vrot.slane %v1082_v29, 4 }
 0x396   : > { %1090 = vst [vmem:[#allocation4] sm:$0xf0] %v1086_v43  ;;  %v1031_v10 = vpop.permute.xlu1 %1030  ;;  %v1321_v1 = vpop.permute.xlu0 %1320 }
 0x397   : > { %v1073_v61 = vsel %vm822_vm7, %v4780_v58, %v1031_v10  ;;  %v1336_v23 = vsel %vm826_vm9, %v1335_v39, %v1321_v1  ;;  %v2791_v22 = vld [vmem:[#allocation4 + $0x38] sm:$0xf]  ;;  %v2789_v58 = vld [vmem:[#allocation4 + $0x20] sm:$0xff]  ;;  %v2786_v41 = vld [vmem:[#allocation4 + $0x48] sm:$0xff] }
 0x398   : > { %1338 = vst [vmem:[#allocation4 + $0x10] sm:$0xf] %v1336_v23  ;;  %2946 = vmatprep.subr.msk.mxu0 %vm2802_vm10, %v2791_v22  ;;  %v1074_v3 = vsel %vm824_vm8, %v1073_v61, %v4767_v33  ;;  %v5000_v33 = vld [vmem:[#allocation33_spill] sm:$0xff] }
 0x399   : > { %v833_v51 = vsel %vm824_vm8, %v4530_v45, %v5000_v33  ;;  %v825_v45 = vsel %vm824_vm8, %v4578_v47, %v5001_v0 }
 0x39a   : > { %v1285_v40 = vpop.permute.xlu1 %1284  ;;  %v1293_v52 = vpop.permute.xlu0 %1292 }
 0x39b   : > { %v1327_v16 = vsel %vm822_vm7, %v4784_v6, %v1285_v40  ;;  %v2790_v38 = vld [vmem:[#allocation4 + $0x40] sm:$0xf]  ;;  %v2787_v6 = vld [vmem:[#allocation4 + $0x28] sm:$0xff] }
 0x39c   : > { %v1328_v37 = vsel %vm824_vm8, %v1327_v16, %v4769_v56  ;;  %2947 = vmatpush1.msk.msra.mxu0 %vm2802_vm10, %v2790_v38 }
 0x39d   : > { %v1329_v30 = vsel %vm826_vm9, %v1328_v37, %v1293_v52  ;;  %2833 = vmatprep.subr.mxu0 %v2789_v58 }
 0x39e   : > { %1337 = vst [vmem:[#allocation4 + $0x18] sm:$0xf] %v1329_v30  ;;  %v1039_v60 = vpop.permute.xlu1 %1038  ;;  %2834 = vmatpush1.msra.mxu0 %v2788_v50  ;;  %v812_v21 = vpop.permute.xlu0 %811 }
 0x39f   : > { %v1075_v59 = vsel %vm826_vm9, %v1074_v3, %v1039_v60  ;;  %v834_v56 = vsel %vm826_vm9, %v833_v51, %v812_v21  ;;  %2835 = vmatprep.subr.mxu0 %v2787_v6  ;;  %v2785_v55 = vld [vmem:[#allocation4 + $0x10] sm:$0xff] }
 0x3a0   : > { %v1085_v57 = vrot.slane %v1075_v59, 4  ;;  %836 = vst [vmem:[#allocation4] sm:$0xf] %v834_v56  ;;  %2836 = vmatpush1.msra.mxu0 %v2786_v41 }
 0x3a1   : > { %2837 = vmatprep.subr.mxu0 %v2785_v55 }
 0x3a2   : > { %1089 = vst [vmem:[#allocation4 + $0x30] sm:$0xf0] %v1085_v57  ;;  %v784_v8 = vpop.permute.xlu1 %783 }
 0x3a3   : > { %v827_v42 = vsel %vm826_vm9, %v825_v45, %v784_v8 }
 0x3a4   : > { %835 = vst [vmem:[#allocation4 + $0x30] sm:$0xf] %v827_v42 }
 0x3a5   : > { %v2784_v53 = vld [vmem:[#allocation4 + $0x18] sm:$0xff] }
 0x3a6   : > { %2838 = vmatpush1.msra.mxu0 %v2784_v53 }
 0x3a7   : > { %v2783_v36 = vld [vmem:[#allocation4] sm:$0xff] }
 0x3a8   : > { %2839 = vmatprep.subr.mxu0 %v2783_v36 }
 0x3ab   : > { %v2782_v19 = vld [vmem:[#allocation4 + $0x30] sm:$0xff]  ;;  %v2796_v9 = vpop.permute.xlu0 %2795 }
 0x3ac   : > { %2840 = vmatpush1.msra.mxu0 %v2782_v19 }
 0x3ad   : > { %2948 = vmatmul.mubr.msk.f32.vlgmr.msra.gmra.mxu0 %vm2798_vm11, %v2781_v4 }
 0x46d   : > { %v2875_v46 = vpop.f32.mrf.mxu0 }
 0x46e   : > { %v2876_v47 = vadd.f32 %v2875_v46, %v2796_v9 }
 0x46f   : > { %v2877_v20 = vpop.f32.mrf.mxu0 }
 0x470   : > { %2880 = vst [vmem:[%s170_s9] sm:$0xff] %v2876_v47  ;;  %v2878_v11 = vadd.f32 %v2877_v20, %v2796_v9 }
 0x472   : > { %2881 = vst [vmem:[%s170_s9 + $0x8] sm:$0xff] %v2878_v11 }
 0x473 PF: > { %s13_s12 = sadd.s32 1, %s3002_s12  }
 0x474   : > { %p10_p4 = scmp.ge.s32.totalorder %s13_s12, 4  }
 0x476   :  { %12 = sbr.rel (!%p10_p4) target bundleno = 1 (0x1), region = 62 }

</bundles_post_ra>
